<compile_context>
chip_gen: v6e
topology: v6e:2x2x1
jax: 0.10.0
libtpu: 0.0.40
codegen_flags: <defaults>
</compile_context>

<pallas_src>
import functools
import math

import jax
import jax.numpy as jnp
from jax.experimental import pallas as pl
from jax.experimental.pallas import tpu as pltpu  # noqa: F401

# ---------------- model config (small synthetic sizes) ----------------
D_MODEL = 32
NHEAD = 4
HEAD_DIM = D_MODEL // NHEAD
FFN = 64
NUM_LAYERS = 2
LN_EPS = 1e-5  # PyTorch LayerNorm default

# TODO(synk): dropout (p=0 in the module config / eval mode) is omitted.


# ---------------------------- kernel ----------------------------------
def _layernorm(x, w, b):
    mean = jnp.mean(x, axis=-1, keepdims=True)
    var = jnp.mean(jnp.square(x - mean), axis=-1, keepdims=True)
    return (x - mean) * jax.lax.rsqrt(var + LN_EPS) * w + b


def _transformer_kernel(x_ref, pe_ref,
                        wqkv_ref, bqkv_ref, wo_ref, bo_ref,
                        ln1w_ref, ln1b_ref, w1_ref, b1_ref, w2_ref, b2_ref,
                        ln2w_ref, ln2b_ref,
                        encw_ref, encb_ref, decw_ref, decb_ref,
                        o_ref, *, batch, num_layers, nhead):
    N, D = x_ref.shape                       # N = S * batch (batch folded in sublanes)
    hd = D // nhead
    scale = 1.0 / math.sqrt(hd)

    # Block-diagonal attention mask, built once (hoisted): row i belongs to
    # batch (i % batch); only same-batch positions attend to each other.
    rows = jax.lax.broadcasted_iota(jnp.int32, (N, N), 0) % batch
    cols = jax.lax.broadcasted_iota(jnp.int32, (N, N), 1) % batch
    attn_bias = jnp.where(rows == cols, 0.0, -1e30).astype(jnp.float32)

    # Positional encoding (pe already expanded to (N, D) in the wrapper).
    x = x_ref[...].astype(jnp.float32) + pe_ref[...].astype(jnp.float32)

    for l in range(num_layers):              # unrolled; weights stacked on layer axis
        # ---- multi-head self-attention: fused QKV, dense out-projection ----
        qkv = jnp.dot(x, wqkv_ref[l], preferred_element_type=jnp.float32) + bqkv_ref[l]
        heads = []
        for h in range(nhead):
            qh = qkv[:, h * hd:(h + 1) * hd]
            kh = qkv[:, D + h * hd:D + (h + 1) * hd]
            vh = qkv[:, 2 * D + h * hd:2 * D + (h + 1) * hd]
            s = jnp.dot(qh, kh.T, preferred_element_type=jnp.float32) * scale + attn_bias
            s = s - jnp.max(s, axis=-1, keepdims=True)
            p = jnp.exp(s)
            p = p * pl.reciprocal(jnp.sum(p, axis=-1, keepdims=True), approx=True)
            heads.append(jnp.dot(p, vh, preferred_element_type=jnp.float32))
        attn = jnp.concatenate(heads, axis=-1)                      # (N, D)
        attn = jnp.dot(attn, wo_ref[l], preferred_element_type=jnp.float32) + bo_ref[l]

        # ---- residual + norm1 (post-norm) ----
        x = _layernorm(x + attn, ln1w_ref[l], ln1b_ref[l])

        # ---- feed-forward (ReLU) + residual + norm2 ----
        h1 = jnp.maximum(
            jnp.dot(x, w1_ref[l], preferred_element_type=jnp.float32) + b1_ref[l], 0.0)
        h2 = jnp.dot(h1, w2_ref[l], preferred_element_type=jnp.float32) + b2_ref[l]
        x = _layernorm(x + h2, ln2w_ref[l], ln2b_ref[l])

    # ---- final encoder LayerNorm + Linear(d_model, 1) ----
    y = _layernorm(x, encw_ref[...], encb_ref[...])
    out = jnp.dot(y, decw_ref[...], preferred_element_type=jnp.float32) + decb_ref[...]
    o_ref[...] = out.astype(o_ref.dtype)                            # (N, 1)


# --------------------------- wrapper -----------------------------------
def _positional_encoding(S, D):
    # Standard sinusoidal positional encoding (PyTorch tutorial PositionalEncoding).
    position = jnp.arange(S, dtype=jnp.float32)[:, None]
    div_term = jnp.exp(jnp.arange(0, D, 2, dtype=jnp.float32) * (-math.log(10000.0) / D))
    pe = jnp.zeros((S, D), jnp.float32)
    pe = pe.at[:, 0::2].set(jnp.sin(position * div_term))
    pe = pe.at[:, 1::2].set(jnp.cos(position * div_term))
    return pe


def vanilla_transformer_seq2seq(x_sbd, params):
    """x_sbd: (S, B, d_model)  ->  (S, B), matching the PyTorch module."""
    S, B, D = x_sbd.shape
    N = S * B
    L = params["wqkv"].shape[0]

    # Fold batch into the sublane axis: row i of xf is (s = i // B, b = i % B).
    xf = x_sbd.reshape(N, D)
    pe = jnp.repeat(_positional_encoding(S, D), B, axis=0)          # (N, D)

    kernel = functools.partial(_transformer_kernel,
                               batch=B, num_layers=L, nhead=NHEAD)
    out = pl.pallas_call(
        kernel,
        out_shape=jax.ShapeDtypeStruct((N, 1), jnp.float32),
    )(xf, pe,
      params["wqkv"], params["bqkv"], params["wo"], params["bo"],
      params["ln1w"], params["ln1b"], params["w1"], params["b1"],
      params["w2"], params["b2"], params["ln2w"], params["ln2b"],
      params["enc_ln_w"], params["enc_ln_b"], params["dec_w"], params["dec_b"])

    return out.reshape(S, B)                                        # squeeze(-1)


# ----------------------- deterministic parameters ------------------------
def init_params(key, d_model=D_MODEL, nhead=NHEAD, ffn=FFN, num_layers=NUM_LAYERS):
    s_d = 1.0 / math.sqrt(d_model)
    s_f = 1.0 / math.sqrt(ffn)
    wqkv, bqkv, wo, bo = [], [], [], []
    ln1w, ln1b, w1, b1, w2, b2, ln2w, ln2b = [], [], [], [], [], [], [], []
    for _ in range(num_layers):
        key, kq, ko, k1, k2, kb = jax.random.split(key, 6)
        # wqkv stands for concat(Wq, Wk, Wv)^T so the kernel computes x @ W^T + b.
        wqkv.append(jax.random.normal(kq, (d_model, 3 * d_model), jnp.float32) * s_d)
        bqkv.append(jax.random.normal(kb, (1, 3 * d_model), jnp.float32) * 0.02)
        wo.append(jax.random.normal(ko, (d_model, d_model), jnp.float32) * s_d)  # Wo^T
        bo.append(jnp.zeros((1, d_model), jnp.float32))
        ln1w.append(jnp.ones((1, d_model), jnp.float32))
        ln1b.append(jnp.zeros((1, d_model), jnp.float32))
        w1.append(jax.random.normal(k1, (d_model, ffn), jnp.float32) * s_d)
        b1.append(jnp.zeros((1, ffn), jnp.float32))
        w2.append(jax.random.normal(k2, (ffn, d_model), jnp.float32) * s_f)
        b2.append(jnp.zeros((1, d_model), jnp.float32))
        ln2w.append(jnp.ones((1, d_model), jnp.float32))
        ln2b.append(jnp.zeros((1, d_model), jnp.float32))
    key, kd = jax.random.split(key)
    # decoder_layer: Linear(d_model, 1); init_weights -> U(-0.1, 0.1) weight, zero bias.
    dec_w = jax.random.uniform(kd, (d_model, 1), jnp.float32, -0.1, 0.1)
    return dict(
        wqkv=jnp.stack(wqkv), bqkv=jnp.stack(bqkv), wo=jnp.stack(wo), bo=jnp.stack(bo),
        ln1w=jnp.stack(ln1w), ln1b=jnp.stack(ln1b),
        w1=jnp.stack(w1), b1=jnp.stack(b1), w2=jnp.stack(w2), b2=jnp.stack(b2),
        ln2w=jnp.stack(ln2w), ln2b=jnp.stack(ln2b),
        enc_ln_w=jnp.ones((1, d_model), jnp.float32),
        enc_ln_b=jnp.zeros((1, d_model), jnp.float32),
        dec_w=dec_w,
        dec_b=jnp.zeros((1, 1), jnp.float32),
    )


# ------------------------------- main ------------------------------------
if __name__ == "__main__":
    S, B = 8, 2
    key = jax.random.PRNGKey(0)
    k_x, k_p = jax.random.split(key)
    x = jax.random.normal(k_x, (S, B, D_MODEL), jnp.float32)   # (seq, batch, d_model)
    params = init_params(k_p)

    out = jax.jit(vanilla_transformer_seq2seq)(x, params)      # (S, B)
    jax.block_until_ready(out)
    assert out.shape == (S, B), out.shape
    print("KERNEL_OK")
</pallas_src>

<mosaic_0001>
module attributes {stable_mosaic.version = 11 : i64} {
  func.func @_transformer_kernel(%arg0: memref<16x32xf32, #tpu.memory_space<vmem>>, %arg1: memref<16x32xf32, #tpu.memory_space<vmem>>, %arg2: memref<2x32x96xf32, #tpu.memory_space<vmem>>, %arg3: memref<2x1x96xf32, #tpu.memory_space<vmem>>, %arg4: memref<2x32x32xf32, #tpu.memory_space<vmem>>, %arg5: memref<2x1x32xf32, #tpu.memory_space<vmem>>, %arg6: memref<2x1x32xf32, #tpu.memory_space<vmem>>, %arg7: memref<2x1x32xf32, #tpu.memory_space<vmem>>, %arg8: memref<2x32x64xf32, #tpu.memory_space<vmem>>, %arg9: memref<2x1x64xf32, #tpu.memory_space<vmem>>, %arg10: memref<2x64x32xf32, #tpu.memory_space<vmem>>, %arg11: memref<2x1x32xf32, #tpu.memory_space<vmem>>, %arg12: memref<2x1x32xf32, #tpu.memory_space<vmem>>, %arg13: memref<2x1x32xf32, #tpu.memory_space<vmem>>, %arg14: memref<1x32xf32, #tpu.memory_space<vmem>>, %arg15: memref<1x32xf32, #tpu.memory_space<vmem>>, %arg16: memref<32x1xf32, #tpu.memory_space<vmem>>, %arg17: memref<1x1xf32, #tpu.memory_space<vmem>>, %arg18: memref<16x1xf32, #tpu.memory_space<vmem>>) attributes {dimension_semantics = [], scalar_prefetch = 0 : i64, scratch_operands = 0 : i64, tpu.core_type = #tpu.core_type<tc>} {
    %0 = tpu.iota {dimensions = array<i32: 0>} : vector<16x16xi32>
    %c2_i32 = arith.constant 2 : i32
    %c0_i32 = arith.constant 0 : i32
    %1 = arith.cmpi eq, %c2_i32, %c0_i32 : i32
    %c1_i32 = arith.constant 1 : i32
    %2 = arith.select %1, %c1_i32, %c2_i32 : i32
    %3 = vector.broadcast %2 : i32 to vector<16x16xi32>
    %4 = arith.remsi %0, %3 : vector<16x16xi32>
    %c0_i32_0 = arith.constant 0 : i32
    %5 = vector.broadcast %c0_i32_0 : i32 to vector<16x16xi32>
    %6 = arith.cmpi ne, %4, %5 : vector<16x16xi32>
    %c0_i32_1 = arith.constant 0 : i32
    %7 = vector.broadcast %c0_i32_1 : i32 to vector<16x16xi32>
    %8 = arith.cmpi slt, %4, %7 : vector<16x16xi32>
    %c0_i32_2 = arith.constant 0 : i32
    %9 = arith.cmpi slt, %2, %c0_i32_2 : i32
    %10 = vector.broadcast %9 : i1 to vector<16x16xi1>
    %11 = vector.broadcast %10 : vector<16x16xi1> to vector<16x16xi1>
    %12 = arith.xori %8, %11 : vector<16x16xi1>
    %13 = arith.andi %12, %6 : vector<16x16xi1>
    %14 = vector.broadcast %2 : i32 to vector<16x16xi32>
    %15 = arith.addi %4, %14 : vector<16x16xi32>
    %16 = arith.select %13, %15, %4 : vector<16x16xi1>, vector<16x16xi32>
    %17 = tpu.iota {dimensions = array<i32: 1>} : vector<16x16xi32>
    %c2_i32_3 = arith.constant 2 : i32
    %c0_i32_4 = arith.constant 0 : i32
    %18 = arith.cmpi eq, %c2_i32_3, %c0_i32_4 : i32
    %c1_i32_5 = arith.constant 1 : i32
    %19 = arith.select %18, %c1_i32_5, %c2_i32_3 : i32
    %20 = vector.broadcast %19 : i32 to vector<16x16xi32>
    %21 = arith.remsi %17, %20 : vector<16x16xi32>
    %c0_i32_6 = arith.constant 0 : i32
    %22 = vector.broadcast %c0_i32_6 : i32 to vector<16x16xi32>
    %23 = arith.cmpi ne, %21, %22 : vector<16x16xi32>
    %c0_i32_7 = arith.constant 0 : i32
    %24 = vector.broadcast %c0_i32_7 : i32 to vector<16x16xi32>
    %25 = arith.cmpi slt, %21, %24 : vector<16x16xi32>
    %c0_i32_8 = arith.constant 0 : i32
    %26 = arith.cmpi slt, %19, %c0_i32_8 : i32
    %27 = vector.broadcast %26 : i1 to vector<16x16xi1>
    %28 = vector.broadcast %27 : vector<16x16xi1> to vector<16x16xi1>
    %29 = arith.xori %25, %28 : vector<16x16xi1>
    %30 = arith.andi %29, %23 : vector<16x16xi1>
    %31 = vector.broadcast %19 : i32 to vector<16x16xi32>
    %32 = arith.addi %21, %31 : vector<16x16xi32>
    %33 = arith.select %30, %32, %21 : vector<16x16xi1>, vector<16x16xi32>
    %34 = arith.cmpi eq, %16, %33 : vector<16x16xi32>
    %cst = arith.constant 0.000000e+00 : f32
    %cst_9 = arith.constant -1.000000e+30 : f32
    %35 = vector.broadcast %cst : f32 to vector<16x16xf32>
    %36 = vector.broadcast %cst_9 : f32 to vector<16x16xf32>
    %37 = arith.select %34, %35, %36 : vector<16x16xi1>, vector<16x16xf32>
    %c0 = arith.constant 0 : index
    %c0_10 = arith.constant 0 : index
    %38 = vector.load %arg0[%c0, %c0_10] : memref<16x32xf32, #tpu.memory_space<vmem>>, vector<16x32xf32>
    %c0_11 = arith.constant 0 : index
    %c0_12 = arith.constant 0 : index
    %39 = vector.load %arg1[%c0_11, %c0_12] : memref<16x32xf32, #tpu.memory_space<vmem>>, vector<16x32xf32>
    %40 = arith.addf %38, %39 : vector<16x32xf32>
    %c0_13 = arith.constant 0 : index
    %c0_14 = arith.constant 0 : index
    %c0_15 = arith.constant 0 : index
    %41 = vector.load %arg2[%c0_13, %c0_14, %c0_15] : memref<2x32x96xf32, #tpu.memory_space<vmem>>, vector<1x32x96xf32>
    %42 = vector.shape_cast %41 : vector<1x32x96xf32> to vector<32x96xf32>
    %cst_16 = arith.constant dense<0.000000e+00> : vector<16x96xf32>
    %43 = tpu.matmul %40, %42, %cst_16 {dimension_numbers = #tpu.dot_dimension_numbers<[1], [0], [0], [1], [0, 0, 1, 1], [], []>} : vector<16x32xf32>, vector<32x96xf32>, vector<16x96xf32> -> vector<16x96xf32>
    %c0_17 = arith.constant 0 : index
    %c0_18 = arith.constant 0 : index
    %c0_19 = arith.constant 0 : index
    %44 = vector.load %arg3[%c0_17, %c0_18, %c0_19] : memref<2x1x96xf32, #tpu.memory_space<vmem>>, vector<1x1x96xf32>
    %45 = vector.shape_cast %44 : vector<1x1x96xf32> to vector<1x96xf32>
    %46 = vector.broadcast %45 : vector<1x96xf32> to vector<16x96xf32>
    %47 = arith.addf %43, %46 : vector<16x96xf32>
    %48 = vector.extract_strided_slice %47 {offsets = [0, 0], sizes = [16, 8], strides = [1, 1]} : vector<16x96xf32> to vector<16x8xf32>
    %49 = vector.extract_strided_slice %47 {offsets = [0, 32], sizes = [16, 8], strides = [1, 1]} : vector<16x96xf32> to vector<16x8xf32>
    %50 = vector.extract_strided_slice %47 {offsets = [0, 64], sizes = [16, 8], strides = [1, 1]} : vector<16x96xf32> to vector<16x8xf32>
    %51 = tpu.transpose %49, [1, 0] : vector<16x8xf32> -> vector<8x16xf32>
    %cst_20 = arith.constant dense<0.000000e+00> : vector<16x16xf32>
    %52 = tpu.matmul %48, %51, %cst_20 {dimension_numbers = #tpu.dot_dimension_numbers<[1], [0], [0], [1], [0, 0, 1, 1], [], []>} : vector<16x8xf32>, vector<8x16xf32>, vector<16x16xf32> -> vector<16x16xf32>
    %cst_21 = arith.constant 0.353553385 : f32
    %53 = vector.broadcast %cst_21 : f32 to vector<16x16xf32>
    %54 = arith.mulf %52, %53 : vector<16x16xf32>
    %55 = arith.addf %54, %37 : vector<16x16xf32>
    %cst_22 = arith.constant dense<0xFF800000> : vector<16xf32>
    %56 = vector.multi_reduction <maximumf>, %55, %cst_22 [1] : vector<16x16xf32> to vector<16xf32>
    %57 = vector.shape_cast %56 : vector<16xf32> to vector<16x1xf32>
    %58 = vector.broadcast %57 : vector<16x1xf32> to vector<16x16xf32>
    %59 = arith.subf %55, %58 : vector<16x16xf32>
    %60 = math.exp %59 : vector<16x16xf32>
    %cst_23 = arith.constant dense<0.000000e+00> : vector<16xf32>
    %61 = vector.multi_reduction <add>, %60, %cst_23 [1] : vector<16x16xf32> to vector<16xf32>
    %62 = vector.shape_cast %61 : vector<16xf32> to vector<16x1xf32>
    %63 = tpu.reciprocal %62 {approx = true} : vector<16x1xf32> -> vector<16x1xf32>
    %64 = vector.broadcast %63 : vector<16x1xf32> to vector<16x16xf32>
    %65 = arith.mulf %60, %64 : vector<16x16xf32>
    %cst_24 = arith.constant dense<0.000000e+00> : vector<16x8xf32>
    %66 = tpu.matmul %65, %50, %cst_24 {dimension_numbers = #tpu.dot_dimension_numbers<[1], [0], [0], [1], [0, 0, 1, 1], [], []>} : vector<16x16xf32>, vector<16x8xf32>, vector<16x8xf32> -> vector<16x8xf32>
    %67 = vector.extract_strided_slice %47 {offsets = [0, 8], sizes = [16, 8], strides = [1, 1]} : vector<16x96xf32> to vector<16x8xf32>
    %68 = vector.extract_strided_slice %47 {offsets = [0, 40], sizes = [16, 8], strides = [1, 1]} : vector<16x96xf32> to vector<16x8xf32>
    %69 = vector.extract_strided_slice %47 {offsets = [0, 72], sizes = [16, 8], strides = [1, 1]} : vector<16x96xf32> to vector<16x8xf32>
    %70 = tpu.transpose %68, [1, 0] : vector<16x8xf32> -> vector<8x16xf32>
    %cst_25 = arith.constant dense<0.000000e+00> : vector<16x16xf32>
    %71 = tpu.matmul %67, %70, %cst_25 {dimension_numbers = #tpu.dot_dimension_numbers<[1], [0], [0], [1], [0, 0, 1, 1], [], []>} : vector<16x8xf32>, vector<8x16xf32>, vector<16x16xf32> -> vector<16x16xf32>
    %cst_26 = arith.constant 0.353553385 : f32
    %72 = vector.broadcast %cst_26 : f32 to vector<16x16xf32>
    %73 = arith.mulf %71, %72 : vector<16x16xf32>
    %74 = arith.addf %73, %37 : vector<16x16xf32>
    %cst_27 = arith.constant dense<0xFF800000> : vector<16xf32>
    %75 = vector.multi_reduction <maximumf>, %74, %cst_27 [1] : vector<16x16xf32> to vector<16xf32>
    %76 = vector.shape_cast %75 : vector<16xf32> to vector<16x1xf32>
    %77 = vector.broadcast %76 : vector<16x1xf32> to vector<16x16xf32>
    %78 = arith.subf %74, %77 : vector<16x16xf32>
    %79 = math.exp %78 : vector<16x16xf32>
    %cst_28 = arith.constant dense<0.000000e+00> : vector<16xf32>
    %80 = vector.multi_reduction <add>, %79, %cst_28 [1] : vector<16x16xf32> to vector<16xf32>
    %81 = vector.shape_cast %80 : vector<16xf32> to vector<16x1xf32>
    %82 = tpu.reciprocal %81 {approx = true} : vector<16x1xf32> -> vector<16x1xf32>
    %83 = vector.broadcast %82 : vector<16x1xf32> to vector<16x16xf32>
    %84 = arith.mulf %79, %83 : vector<16x16xf32>
    %cst_29 = arith.constant dense<0.000000e+00> : vector<16x8xf32>
    %85 = tpu.matmul %84, %69, %cst_29 {dimension_numbers = #tpu.dot_dimension_numbers<[1], [0], [0], [1], [0, 0, 1, 1], [], []>} : vector<16x16xf32>, vector<16x8xf32>, vector<16x8xf32> -> vector<16x8xf32>
    %86 = vector.extract_strided_slice %47 {offsets = [0, 16], sizes = [16, 8], strides = [1, 1]} : vector<16x96xf32> to vector<16x8xf32>
    %87 = vector.extract_strided_slice %47 {offsets = [0, 48], sizes = [16, 8], strides = [1, 1]} : vector<16x96xf32> to vector<16x8xf32>
    %88 = vector.extract_strided_slice %47 {offsets = [0, 80], sizes = [16, 8], strides = [1, 1]} : vector<16x96xf32> to vector<16x8xf32>
    %89 = tpu.transpose %87, [1, 0] : vector<16x8xf32> -> vector<8x16xf32>
    %cst_30 = arith.constant dense<0.000000e+00> : vector<16x16xf32>
    %90 = tpu.matmul %86, %89, %cst_30 {dimension_numbers = #tpu.dot_dimension_numbers<[1], [0], [0], [1], [0, 0, 1, 1], [], []>} : vector<16x8xf32>, vector<8x16xf32>, vector<16x16xf32> -> vector<16x16xf32>
    %cst_31 = arith.constant 0.353553385 : f32
    %91 = vector.broadcast %cst_31 : f32 to vector<16x16xf32>
    %92 = arith.mulf %90, %91 : vector<16x16xf32>
    %93 = arith.addf %92, %37 : vector<16x16xf32>
    %cst_32 = arith.constant dense<0xFF800000> : vector<16xf32>
    %94 = vector.multi_reduction <maximumf>, %93, %cst_32 [1] : vector<16x16xf32> to vector<16xf32>
    %95 = vector.shape_cast %94 : vector<16xf32> to vector<16x1xf32>
    %96 = vector.broadcast %95 : vector<16x1xf32> to vector<16x16xf32>
    %97 = arith.subf %93, %96 : vector<16x16xf32>
    %98 = math.exp %97 : vector<16x16xf32>
    %cst_33 = arith.constant dense<0.000000e+00> : vector<16xf32>
    %99 = vector.multi_reduction <add>, %98, %cst_33 [1] : vector<16x16xf32> to vector<16xf32>
    %100 = vector.shape_cast %99 : vector<16xf32> to vector<16x1xf32>
    %101 = tpu.reciprocal %100 {approx = true} : vector<16x1xf32> -> vector<16x1xf32>
    %102 = vector.broadcast %101 : vector<16x1xf32> to vector<16x16xf32>
    %103 = arith.mulf %98, %102 : vector<16x16xf32>
    %cst_34 = arith.constant dense<0.000000e+00> : vector<16x8xf32>
    %104 = tpu.matmul %103, %88, %cst_34 {dimension_numbers = #tpu.dot_dimension_numbers<[1], [0], [0], [1], [0, 0, 1, 1], [], []>} : vector<16x16xf32>, vector<16x8xf32>, vector<16x8xf32> -> vector<16x8xf32>
    %105 = vector.extract_strided_slice %47 {offsets = [0, 24], sizes = [16, 8], strides = [1, 1]} : vector<16x96xf32> to vector<16x8xf32>
    %106 = vector.extract_strided_slice %47 {offsets = [0, 56], sizes = [16, 8], strides = [1, 1]} : vector<16x96xf32> to vector<16x8xf32>
    %107 = vector.extract_strided_slice %47 {offsets = [0, 88], sizes = [16, 8], strides = [1, 1]} : vector<16x96xf32> to vector<16x8xf32>
    %108 = tpu.transpose %106, [1, 0] : vector<16x8xf32> -> vector<8x16xf32>
    %cst_35 = arith.constant dense<0.000000e+00> : vector<16x16xf32>
    %109 = tpu.matmul %105, %108, %cst_35 {dimension_numbers = #tpu.dot_dimension_numbers<[1], [0], [0], [1], [0, 0, 1, 1], [], []>} : vector<16x8xf32>, vector<8x16xf32>, vector<16x16xf32> -> vector<16x16xf32>
    %cst_36 = arith.constant 0.353553385 : f32
    %110 = vector.broadcast %cst_36 : f32 to vector<16x16xf32>
    %111 = arith.mulf %109, %110 : vector<16x16xf32>
    %112 = arith.addf %111, %37 : vector<16x16xf32>
    %cst_37 = arith.constant dense<0xFF800000> : vector<16xf32>
    %113 = vector.multi_reduction <maximumf>, %112, %cst_37 [1] : vector<16x16xf32> to vector<16xf32>
    %114 = vector.shape_cast %113 : vector<16xf32> to vector<16x1xf32>
    %115 = vector.broadcast %114 : vector<16x1xf32> to vector<16x16xf32>
    %116 = arith.subf %112, %115 : vector<16x16xf32>
    %117 = math.exp %116 : vector<16x16xf32>
    %cst_38 = arith.constant dense<0.000000e+00> : vector<16xf32>
    %118 = vector.multi_reduction <add>, %117, %cst_38 [1] : vector<16x16xf32> to vector<16xf32>
    %119 = vector.shape_cast %118 : vector<16xf32> to vector<16x1xf32>
    %120 = tpu.reciprocal %119 {approx = true} : vector<16x1xf32> -> vector<16x1xf32>
    %121 = vector.broadcast %120 : vector<16x1xf32> to vector<16x16xf32>
    %122 = arith.mulf %117, %121 : vector<16x16xf32>
    %cst_39 = arith.constant dense<0.000000e+00> : vector<16x8xf32>
    %123 = tpu.matmul %122, %107, %cst_39 {dimension_numbers = #tpu.dot_dimension_numbers<[1], [0], [0], [1], [0, 0, 1, 1], [], []>} : vector<16x16xf32>, vector<16x8xf32>, vector<16x8xf32> -> vector<16x8xf32>
    %124 = tpu.concatenate %66, %85, %104, %123 in 1 : vector<16x8xf32>, vector<16x8xf32>, vector<16x8xf32>, vector<16x8xf32> -> vector<16x32xf32>
    %c0_40 = arith.constant 0 : index
    %c0_41 = arith.constant 0 : index
    %c0_42 = arith.constant 0 : index
    %125 = vector.load %arg4[%c0_40, %c0_41, %c0_42] : memref<2x32x32xf32, #tpu.memory_space<vmem>>, vector<1x32x32xf32>
    %126 = vector.shape_cast %125 : vector<1x32x32xf32> to vector<32x32xf32>
    %cst_43 = arith.constant dense<0.000000e+00> : vector<16x32xf32>
    %127 = tpu.matmul %124, %126, %cst_43 {dimension_numbers = #tpu.dot_dimension_numbers<[1], [0], [0], [1], [0, 0, 1, 1], [], []>} : vector<16x32xf32>, vector<32x32xf32>, vector<16x32xf32> -> vector<16x32xf32>
    %c0_44 = arith.constant 0 : index
    %c0_45 = arith.constant 0 : index
    %c0_46 = arith.constant 0 : index
    %128 = vector.load %arg5[%c0_44, %c0_45, %c0_46] : memref<2x1x32xf32, #tpu.memory_space<vmem>>, vector<1x1x32xf32>
    %129 = vector.shape_cast %128 : vector<1x1x32xf32> to vector<1x32xf32>
    %130 = vector.broadcast %129 : vector<1x32xf32> to vector<16x32xf32>
    %131 = arith.addf %127, %130 : vector<16x32xf32>
    %132 = arith.addf %40, %131 : vector<16x32xf32>
    %c0_47 = arith.constant 0 : index
    %c0_48 = arith.constant 0 : index
    %c0_49 = arith.constant 0 : index
    %133 = vector.load %arg6[%c0_47, %c0_48, %c0_49] : memref<2x1x32xf32, #tpu.memory_space<vmem>>, vector<1x1x32xf32>
    %134 = vector.shape_cast %133 : vector<1x1x32xf32> to vector<1x32xf32>
    %c0_50 = arith.constant 0 : index
    %c0_51 = arith.constant 0 : index
    %c0_52 = arith.constant 0 : index
    %135 = vector.load %arg7[%c0_50, %c0_51, %c0_52] : memref<2x1x32xf32, #tpu.memory_space<vmem>>, vector<1x1x32xf32>
    %136 = vector.shape_cast %135 : vector<1x1x32xf32> to vector<1x32xf32>
    %cst_53 = arith.constant dense<0.000000e+00> : vector<16xf32>
    %137 = vector.multi_reduction <add>, %132, %cst_53 [1] : vector<16x32xf32> to vector<16xf32>
    %138 = vector.shape_cast %137 : vector<16xf32> to vector<16x1xf32>
    %cst_54 = arith.constant 3.200000e+01 : f32
    %139 = vector.broadcast %cst_54 : f32 to vector<16x1xf32>
    %140 = arith.divf %138, %139 : vector<16x1xf32>
    %141 = vector.broadcast %140 : vector<16x1xf32> to vector<16x32xf32>
    %142 = arith.subf %132, %141 : vector<16x32xf32>
    %143 = arith.mulf %142, %142 : vector<16x32xf32>
    %cst_55 = arith.constant dense<0.000000e+00> : vector<16xf32>
    %144 = vector.multi_reduction <add>, %143, %cst_55 [1] : vector<16x32xf32> to vector<16xf32>
    %145 = vector.shape_cast %144 : vector<16xf32> to vector<16x1xf32>
    %cst_56 = arith.constant 3.200000e+01 : f32
    %146 = vector.broadcast %cst_56 : f32 to vector<16x1xf32>
    %147 = arith.divf %145, %146 : vector<16x1xf32>
    %148 = vector.broadcast %140 : vector<16x1xf32> to vector<16x32xf32>
    %149 = arith.subf %132, %148 : vector<16x32xf32>
    %cst_57 = arith.constant 9.99999974E-6 : f32
    %150 = vector.broadcast %cst_57 : f32 to vector<16x1xf32>
    %151 = arith.addf %147, %150 : vector<16x1xf32>
    %152 = math.rsqrt %151 : vector<16x1xf32>
    %153 = vector.broadcast %152 : vector<16x1xf32> to vector<16x32xf32>
    %154 = arith.mulf %149, %153 : vector<16x32xf32>
    %155 = vector.broadcast %134 : vector<1x32xf32> to vector<16x32xf32>
    %156 = arith.mulf %154, %155 : vector<16x32xf32>
    %157 = vector.broadcast %136 : vector<1x32xf32> to vector<16x32xf32>
    %158 = arith.addf %156, %157 : vector<16x32xf32>
    %c0_58 = arith.constant 0 : index
    %c0_59 = arith.constant 0 : index
    %c0_60 = arith.constant 0 : index
    %159 = vector.load %arg8[%c0_58, %c0_59, %c0_60] : memref<2x32x64xf32, #tpu.memory_space<vmem>>, vector<1x32x64xf32>
    %160 = vector.shape_cast %159 : vector<1x32x64xf32> to vector<32x64xf32>
    %cst_61 = arith.constant dense<0.000000e+00> : vector<16x64xf32>
    %161 = tpu.matmul %158, %160, %cst_61 {dimension_numbers = #tpu.dot_dimension_numbers<[1], [0], [0], [1], [0, 0, 1, 1], [], []>} : vector<16x32xf32>, vector<32x64xf32>, vector<16x64xf32> -> vector<16x64xf32>
    %c0_62 = arith.constant 0 : index
    %c0_63 = arith.constant 0 : index
    %c0_64 = arith.constant 0 : index
    %162 = vector.load %arg9[%c0_62, %c0_63, %c0_64] : memref<2x1x64xf32, #tpu.memory_space<vmem>>, vector<1x1x64xf32>
    %163 = vector.shape_cast %162 : vector<1x1x64xf32> to vector<1x64xf32>
    %164 = vector.broadcast %163 : vector<1x64xf32> to vector<16x64xf32>
    %165 = arith.addf %161, %164 : vector<16x64xf32>
    %cst_65 = arith.constant 0.000000e+00 : f32
    %166 = vector.broadcast %cst_65 : f32 to vector<16x64xf32>
    %167 = arith.maximumf %165, %166 : vector<16x64xf32>
    %c0_66 = arith.constant 0 : index
    %c0_67 = arith.constant 0 : index
    %c0_68 = arith.constant 0 : index
    %168 = vector.load %arg10[%c0_66, %c0_67, %c0_68] : memref<2x64x32xf32, #tpu.memory_space<vmem>>, vector<1x64x32xf32>
    %169 = vector.shape_cast %168 : vector<1x64x32xf32> to vector<64x32xf32>
    %cst_69 = arith.constant dense<0.000000e+00> : vector<16x32xf32>
    %170 = tpu.matmul %167, %169, %cst_69 {dimension_numbers = #tpu.dot_dimension_numbers<[1], [0], [0], [1], [0, 0, 1, 1], [], []>} : vector<16x64xf32>, vector<64x32xf32>, vector<16x32xf32> -> vector<16x32xf32>
    %c0_70 = arith.constant 0 : index
    %c0_71 = arith.constant 0 : index
    %c0_72 = arith.constant 0 : index
    %171 = vector.load %arg11[%c0_70, %c0_71, %c0_72] : memref<2x1x32xf32, #tpu.memory_space<vmem>>, vector<1x1x32xf32>
    %172 = vector.shape_cast %171 : vector<1x1x32xf32> to vector<1x32xf32>
    %173 = vector.broadcast %172 : vector<1x32xf32> to vector<16x32xf32>
    %174 = arith.addf %170, %173 : vector<16x32xf32>
    %175 = arith.addf %158, %174 : vector<16x32xf32>
    %c0_73 = arith.constant 0 : index
    %c0_74 = arith.constant 0 : index
    %c0_75 = arith.constant 0 : index
    %176 = vector.load %arg12[%c0_73, %c0_74, %c0_75] : memref<2x1x32xf32, #tpu.memory_space<vmem>>, vector<1x1x32xf32>
    %177 = vector.shape_cast %176 : vector<1x1x32xf32> to vector<1x32xf32>
    %c0_76 = arith.constant 0 : index
    %c0_77 = arith.constant 0 : index
    %c0_78 = arith.constant 0 : index
    %178 = vector.load %arg13[%c0_76, %c0_77, %c0_78] : memref<2x1x32xf32, #tpu.memory_space<vmem>>, vector<1x1x32xf32>
    %179 = vector.shape_cast %178 : vector<1x1x32xf32> to vector<1x32xf32>
    %cst_79 = arith.constant dense<0.000000e+00> : vector<16xf32>
    %180 = vector.multi_reduction <add>, %175, %cst_79 [1] : vector<16x32xf32> to vector<16xf32>
    %181 = vector.shape_cast %180 : vector<16xf32> to vector<16x1xf32>
    %cst_80 = arith.constant 3.200000e+01 : f32
    %182 = vector.broadcast %cst_80 : f32 to vector<16x1xf32>
    %183 = arith.divf %181, %182 : vector<16x1xf32>
    %184 = vector.broadcast %183 : vector<16x1xf32> to vector<16x32xf32>
    %185 = arith.subf %175, %184 : vector<16x32xf32>
    %186 = arith.mulf %185, %185 : vector<16x32xf32>
    %cst_81 = arith.constant dense<0.000000e+00> : vector<16xf32>
    %187 = vector.multi_reduction <add>, %186, %cst_81 [1] : vector<16x32xf32> to vector<16xf32>
    %188 = vector.shape_cast %187 : vector<16xf32> to vector<16x1xf32>
    %cst_82 = arith.constant 3.200000e+01 : f32
    %189 = vector.broadcast %cst_82 : f32 to vector<16x1xf32>
    %190 = arith.divf %188, %189 : vector<16x1xf32>
    %191 = vector.broadcast %183 : vector<16x1xf32> to vector<16x32xf32>
    %192 = arith.subf %175, %191 : vector<16x32xf32>
    %cst_83 = arith.constant 9.99999974E-6 : f32
    %193 = vector.broadcast %cst_83 : f32 to vector<16x1xf32>
    %194 = arith.addf %190, %193 : vector<16x1xf32>
    %195 = math.rsqrt %194 : vector<16x1xf32>
    %196 = vector.broadcast %195 : vector<16x1xf32> to vector<16x32xf32>
    %197 = arith.mulf %192, %196 : vector<16x32xf32>
    %198 = vector.broadcast %177 : vector<1x32xf32> to vector<16x32xf32>
    %199 = arith.mulf %197, %198 : vector<16x32xf32>
    %200 = vector.broadcast %179 : vector<1x32xf32> to vector<16x32xf32>
    %201 = arith.addf %199, %200 : vector<16x32xf32>
    %c1 = arith.constant 1 : index
    %c0_84 = arith.constant 0 : index
    %c0_85 = arith.constant 0 : index
    %202 = vector.load %arg2[%c1, %c0_84, %c0_85] : memref<2x32x96xf32, #tpu.memory_space<vmem>>, vector<1x32x96xf32>
    %203 = vector.shape_cast %202 : vector<1x32x96xf32> to vector<32x96xf32>
    %cst_86 = arith.constant dense<0.000000e+00> : vector<16x96xf32>
    %204 = tpu.matmul %201, %203, %cst_86 {dimension_numbers = #tpu.dot_dimension_numbers<[1], [0], [0], [1], [0, 0, 1, 1], [], []>} : vector<16x32xf32>, vector<32x96xf32>, vector<16x96xf32> -> vector<16x96xf32>
    %c1_87 = arith.constant 1 : index
    %c0_88 = arith.constant 0 : index
    %c0_89 = arith.constant 0 : index
    %205 = vector.load %arg3[%c1_87, %c0_88, %c0_89] : memref<2x1x96xf32, #tpu.memory_space<vmem>>, vector<1x1x96xf32>
    %206 = vector.shape_cast %205 : vector<1x1x96xf32> to vector<1x96xf32>
    %207 = vector.broadcast %206 : vector<1x96xf32> to vector<16x96xf32>
    %208 = arith.addf %204, %207 : vector<16x96xf32>
    %209 = vector.extract_strided_slice %208 {offsets = [0, 0], sizes = [16, 8], strides = [1, 1]} : vector<16x96xf32> to vector<16x8xf32>
    %210 = vector.extract_strided_slice %208 {offsets = [0, 32], sizes = [16, 8], strides = [1, 1]} : vector<16x96xf32> to vector<16x8xf32>
    %211 = vector.extract_strided_slice %208 {offsets = [0, 64], sizes = [16, 8], strides = [1, 1]} : vector<16x96xf32> to vector<16x8xf32>
    %212 = tpu.transpose %210, [1, 0] : vector<16x8xf32> -> vector<8x16xf32>
    %cst_90 = arith.constant dense<0.000000e+00> : vector<16x16xf32>
    %213 = tpu.matmul %209, %212, %cst_90 {dimension_numbers = #tpu.dot_dimension_numbers<[1], [0], [0], [1], [0, 0, 1, 1], [], []>} : vector<16x8xf32>, vector<8x16xf32>, vector<16x16xf32> -> vector<16x16xf32>
    %cst_91 = arith.constant 0.353553385 : f32
    %214 = vector.broadcast %cst_91 : f32 to vector<16x16xf32>
    %215 = arith.mulf %213, %214 : vector<16x16xf32>
    %216 = arith.addf %215, %37 : vector<16x16xf32>
    %cst_92 = arith.constant dense<0xFF800000> : vector<16xf32>
    %217 = vector.multi_reduction <maximumf>, %216, %cst_92 [1] : vector<16x16xf32> to vector<16xf32>
    %218 = vector.shape_cast %217 : vector<16xf32> to vector<16x1xf32>
    %219 = vector.broadcast %218 : vector<16x1xf32> to vector<16x16xf32>
    %220 = arith.subf %216, %219 : vector<16x16xf32>
    %221 = math.exp %220 : vector<16x16xf32>
    %cst_93 = arith.constant dense<0.000000e+00> : vector<16xf32>
    %222 = vector.multi_reduction <add>, %221, %cst_93 [1] : vector<16x16xf32> to vector<16xf32>
    %223 = vector.shape_cast %222 : vector<16xf32> to vector<16x1xf32>
    %224 = tpu.reciprocal %223 {approx = true} : vector<16x1xf32> -> vector<16x1xf32>
    %225 = vector.broadcast %224 : vector<16x1xf32> to vector<16x16xf32>
    %226 = arith.mulf %221, %225 : vector<16x16xf32>
    %cst_94 = arith.constant dense<0.000000e+00> : vector<16x8xf32>
    %227 = tpu.matmul %226, %211, %cst_94 {dimension_numbers = #tpu.dot_dimension_numbers<[1], [0], [0], [1], [0, 0, 1, 1], [], []>} : vector<16x16xf32>, vector<16x8xf32>, vector<16x8xf32> -> vector<16x8xf32>
    %228 = vector.extract_strided_slice %208 {offsets = [0, 8], sizes = [16, 8], strides = [1, 1]} : vector<16x96xf32> to vector<16x8xf32>
    %229 = vector.extract_strided_slice %208 {offsets = [0, 40], sizes = [16, 8], strides = [1, 1]} : vector<16x96xf32> to vector<16x8xf32>
    %230 = vector.extract_strided_slice %208 {offsets = [0, 72], sizes = [16, 8], strides = [1, 1]} : vector<16x96xf32> to vector<16x8xf32>
    %231 = tpu.transpose %229, [1, 0] : vector<16x8xf32> -> vector<8x16xf32>
    %cst_95 = arith.constant dense<0.000000e+00> : vector<16x16xf32>
    %232 = tpu.matmul %228, %231, %cst_95 {dimension_numbers = #tpu.dot_dimension_numbers<[1], [0], [0], [1], [0, 0, 1, 1], [], []>} : vector<16x8xf32>, vector<8x16xf32>, vector<16x16xf32> -> vector<16x16xf32>
    %cst_96 = arith.constant 0.353553385 : f32
    %233 = vector.broadcast %cst_96 : f32 to vector<16x16xf32>
    %234 = arith.mulf %232, %233 : vector<16x16xf32>
    %235 = arith.addf %234, %37 : vector<16x16xf32>
    %cst_97 = arith.constant dense<0xFF800000> : vector<16xf32>
    %236 = vector.multi_reduction <maximumf>, %235, %cst_97 [1] : vector<16x16xf32> to vector<16xf32>
    %237 = vector.shape_cast %236 : vector<16xf32> to vector<16x1xf32>
    %238 = vector.broadcast %237 : vector<16x1xf32> to vector<16x16xf32>
    %239 = arith.subf %235, %238 : vector<16x16xf32>
    %240 = math.exp %239 : vector<16x16xf32>
    %cst_98 = arith.constant dense<0.000000e+00> : vector<16xf32>
    %241 = vector.multi_reduction <add>, %240, %cst_98 [1] : vector<16x16xf32> to vector<16xf32>
    %242 = vector.shape_cast %241 : vector<16xf32> to vector<16x1xf32>
    %243 = tpu.reciprocal %242 {approx = true} : vector<16x1xf32> -> vector<16x1xf32>
    %244 = vector.broadcast %243 : vector<16x1xf32> to vector<16x16xf32>
    %245 = arith.mulf %240, %244 : vector<16x16xf32>
    %cst_99 = arith.constant dense<0.000000e+00> : vector<16x8xf32>
    %246 = tpu.matmul %245, %230, %cst_99 {dimension_numbers = #tpu.dot_dimension_numbers<[1], [0], [0], [1], [0, 0, 1, 1], [], []>} : vector<16x16xf32>, vector<16x8xf32>, vector<16x8xf32> -> vector<16x8xf32>
    %247 = vector.extract_strided_slice %208 {offsets = [0, 16], sizes = [16, 8], strides = [1, 1]} : vector<16x96xf32> to vector<16x8xf32>
    %248 = vector.extract_strided_slice %208 {offsets = [0, 48], sizes = [16, 8], strides = [1, 1]} : vector<16x96xf32> to vector<16x8xf32>
    %249 = vector.extract_strided_slice %208 {offsets = [0, 80], sizes = [16, 8], strides = [1, 1]} : vector<16x96xf32> to vector<16x8xf32>
    %250 = tpu.transpose %248, [1, 0] : vector<16x8xf32> -> vector<8x16xf32>
    %cst_100 = arith.constant dense<0.000000e+00> : vector<16x16xf32>
    %251 = tpu.matmul %247, %250, %cst_100 {dimension_numbers = #tpu.dot_dimension_numbers<[1], [0], [0], [1], [0, 0, 1, 1], [], []>} : vector<16x8xf32>, vector<8x16xf32>, vector<16x16xf32> -> vector<16x16xf32>
    %cst_101 = arith.constant 0.353553385 : f32
    %252 = vector.broadcast %cst_101 : f32 to vector<16x16xf32>
    %253 = arith.mulf %251, %252 : vector<16x16xf32>
    %254 = arith.addf %253, %37 : vector<16x16xf32>
    %cst_102 = arith.constant dense<0xFF800000> : vector<16xf32>
    %255 = vector.multi_reduction <maximumf>, %254, %cst_102 [1] : vector<16x16xf32> to vector<16xf32>
    %256 = vector.shape_cast %255 : vector<16xf32> to vector<16x1xf32>
    %257 = vector.broadcast %256 : vector<16x1xf32> to vector<16x16xf32>
    %258 = arith.subf %254, %257 : vector<16x16xf32>
    %259 = math.exp %258 : vector<16x16xf32>
    %cst_103 = arith.constant dense<0.000000e+00> : vector<16xf32>
    %260 = vector.multi_reduction <add>, %259, %cst_103 [1] : vector<16x16xf32> to vector<16xf32>
    %261 = vector.shape_cast %260 : vector<16xf32> to vector<16x1xf32>
    %262 = tpu.reciprocal %261 {approx = true} : vector<16x1xf32> -> vector<16x1xf32>
    %263 = vector.broadcast %262 : vector<16x1xf32> to vector<16x16xf32>
    %264 = arith.mulf %259, %263 : vector<16x16xf32>
    %cst_104 = arith.constant dense<0.000000e+00> : vector<16x8xf32>
    %265 = tpu.matmul %264, %249, %cst_104 {dimension_numbers = #tpu.dot_dimension_numbers<[1], [0], [0], [1], [0, 0, 1, 1], [], []>} : vector<16x16xf32>, vector<16x8xf32>, vector<16x8xf32> -> vector<16x8xf32>
    %266 = vector.extract_strided_slice %208 {offsets = [0, 24], sizes = [16, 8], strides = [1, 1]} : vector<16x96xf32> to vector<16x8xf32>
    %267 = vector.extract_strided_slice %208 {offsets = [0, 56], sizes = [16, 8], strides = [1, 1]} : vector<16x96xf32> to vector<16x8xf32>
    %268 = vector.extract_strided_slice %208 {offsets = [0, 88], sizes = [16, 8], strides = [1, 1]} : vector<16x96xf32> to vector<16x8xf32>
    %269 = tpu.transpose %267, [1, 0] : vector<16x8xf32> -> vector<8x16xf32>
    %cst_105 = arith.constant dense<0.000000e+00> : vector<16x16xf32>
    %270 = tpu.matmul %266, %269, %cst_105 {dimension_numbers = #tpu.dot_dimension_numbers<[1], [0], [0], [1], [0, 0, 1, 1], [], []>} : vector<16x8xf32>, vector<8x16xf32>, vector<16x16xf32> -> vector<16x16xf32>
    %cst_106 = arith.constant 0.353553385 : f32
    %271 = vector.broadcast %cst_106 : f32 to vector<16x16xf32>
    %272 = arith.mulf %270, %271 : vector<16x16xf32>
    %273 = arith.addf %272, %37 : vector<16x16xf32>
    %cst_107 = arith.constant dense<0xFF800000> : vector<16xf32>
    %274 = vector.multi_reduction <maximumf>, %273, %cst_107 [1] : vector<16x16xf32> to vector<16xf32>
    %275 = vector.shape_cast %274 : vector<16xf32> to vector<16x1xf32>
    %276 = vector.broadcast %275 : vector<16x1xf32> to vector<16x16xf32>
    %277 = arith.subf %273, %276 : vector<16x16xf32>
    %278 = math.exp %277 : vector<16x16xf32>
    %cst_108 = arith.constant dense<0.000000e+00> : vector<16xf32>
    %279 = vector.multi_reduction <add>, %278, %cst_108 [1] : vector<16x16xf32> to vector<16xf32>
    %280 = vector.shape_cast %279 : vector<16xf32> to vector<16x1xf32>
    %281 = tpu.reciprocal %280 {approx = true} : vector<16x1xf32> -> vector<16x1xf32>
    %282 = vector.broadcast %281 : vector<16x1xf32> to vector<16x16xf32>
    %283 = arith.mulf %278, %282 : vector<16x16xf32>
    %cst_109 = arith.constant dense<0.000000e+00> : vector<16x8xf32>
    %284 = tpu.matmul %283, %268, %cst_109 {dimension_numbers = #tpu.dot_dimension_numbers<[1], [0], [0], [1], [0, 0, 1, 1], [], []>} : vector<16x16xf32>, vector<16x8xf32>, vector<16x8xf32> -> vector<16x8xf32>
    %285 = tpu.concatenate %227, %246, %265, %284 in 1 : vector<16x8xf32>, vector<16x8xf32>, vector<16x8xf32>, vector<16x8xf32> -> vector<16x32xf32>
    %c1_110 = arith.constant 1 : index
    %c0_111 = arith.constant 0 : index
    %c0_112 = arith.constant 0 : index
    %286 = vector.load %arg4[%c1_110, %c0_111, %c0_112] : memref<2x32x32xf32, #tpu.memory_space<vmem>>, vector<1x32x32xf32>
    %287 = vector.shape_cast %286 : vector<1x32x32xf32> to vector<32x32xf32>
    %cst_113 = arith.constant dense<0.000000e+00> : vector<16x32xf32>
    %288 = tpu.matmul %285, %287, %cst_113 {dimension_numbers = #tpu.dot_dimension_numbers<[1], [0], [0], [1], [0, 0, 1, 1], [], []>} : vector<16x32xf32>, vector<32x32xf32>, vector<16x32xf32> -> vector<16x32xf32>
    %c1_114 = arith.constant 1 : index
    %c0_115 = arith.constant 0 : index
    %c0_116 = arith.constant 0 : index
    %289 = vector.load %arg5[%c1_114, %c0_115, %c0_116] : memref<2x1x32xf32, #tpu.memory_space<vmem>>, vector<1x1x32xf32>
    %290 = vector.shape_cast %289 : vector<1x1x32xf32> to vector<1x32xf32>
    %291 = vector.broadcast %290 : vector<1x32xf32> to vector<16x32xf32>
    %292 = arith.addf %288, %291 : vector<16x32xf32>
    %293 = arith.addf %201, %292 : vector<16x32xf32>
    %c1_117 = arith.constant 1 : index
    %c0_118 = arith.constant 0 : index
    %c0_119 = arith.constant 0 : index
    %294 = vector.load %arg6[%c1_117, %c0_118, %c0_119] : memref<2x1x32xf32, #tpu.memory_space<vmem>>, vector<1x1x32xf32>
    %295 = vector.shape_cast %294 : vector<1x1x32xf32> to vector<1x32xf32>
    %c1_120 = arith.constant 1 : index
    %c0_121 = arith.constant 0 : index
    %c0_122 = arith.constant 0 : index
    %296 = vector.load %arg7[%c1_120, %c0_121, %c0_122] : memref<2x1x32xf32, #tpu.memory_space<vmem>>, vector<1x1x32xf32>
    %297 = vector.shape_cast %296 : vector<1x1x32xf32> to vector<1x32xf32>
    %cst_123 = arith.constant dense<0.000000e+00> : vector<16xf32>
    %298 = vector.multi_reduction <add>, %293, %cst_123 [1] : vector<16x32xf32> to vector<16xf32>
    %299 = vector.shape_cast %298 : vector<16xf32> to vector<16x1xf32>
    %cst_124 = arith.constant 3.200000e+01 : f32
    %300 = vector.broadcast %cst_124 : f32 to vector<16x1xf32>
    %301 = arith.divf %299, %300 : vector<16x1xf32>
    %302 = vector.broadcast %301 : vector<16x1xf32> to vector<16x32xf32>
    %303 = arith.subf %293, %302 : vector<16x32xf32>
    %304 = arith.mulf %303, %303 : vector<16x32xf32>
    %cst_125 = arith.constant dense<0.000000e+00> : vector<16xf32>
    %305 = vector.multi_reduction <add>, %304, %cst_125 [1] : vector<16x32xf32> to vector<16xf32>
    %306 = vector.shape_cast %305 : vector<16xf32> to vector<16x1xf32>
    %cst_126 = arith.constant 3.200000e+01 : f32
    %307 = vector.broadcast %cst_126 : f32 to vector<16x1xf32>
    %308 = arith.divf %306, %307 : vector<16x1xf32>
    %309 = vector.broadcast %301 : vector<16x1xf32> to vector<16x32xf32>
    %310 = arith.subf %293, %309 : vector<16x32xf32>
    %cst_127 = arith.constant 9.99999974E-6 : f32
    %311 = vector.broadcast %cst_127 : f32 to vector<16x1xf32>
    %312 = arith.addf %308, %311 : vector<16x1xf32>
    %313 = math.rsqrt %312 : vector<16x1xf32>
    %314 = vector.broadcast %313 : vector<16x1xf32> to vector<16x32xf32>
    %315 = arith.mulf %310, %314 : vector<16x32xf32>
    %316 = vector.broadcast %295 : vector<1x32xf32> to vector<16x32xf32>
    %317 = arith.mulf %315, %316 : vector<16x32xf32>
    %318 = vector.broadcast %297 : vector<1x32xf32> to vector<16x32xf32>
    %319 = arith.addf %317, %318 : vector<16x32xf32>
    %c1_128 = arith.constant 1 : index
    %c0_129 = arith.constant 0 : index
    %c0_130 = arith.constant 0 : index
    %320 = vector.load %arg8[%c1_128, %c0_129, %c0_130] : memref<2x32x64xf32, #tpu.memory_space<vmem>>, vector<1x32x64xf32>
    %321 = vector.shape_cast %320 : vector<1x32x64xf32> to vector<32x64xf32>
    %cst_131 = arith.constant dense<0.000000e+00> : vector<16x64xf32>
    %322 = tpu.matmul %319, %321, %cst_131 {dimension_numbers = #tpu.dot_dimension_numbers<[1], [0], [0], [1], [0, 0, 1, 1], [], []>} : vector<16x32xf32>, vector<32x64xf32>, vector<16x64xf32> -> vector<16x64xf32>
    %c1_132 = arith.constant 1 : index
    %c0_133 = arith.constant 0 : index
    %c0_134 = arith.constant 0 : index
    %323 = vector.load %arg9[%c1_132, %c0_133, %c0_134] : memref<2x1x64xf32, #tpu.memory_space<vmem>>, vector<1x1x64xf32>
    %324 = vector.shape_cast %323 : vector<1x1x64xf32> to vector<1x64xf32>
    %325 = vector.broadcast %324 : vector<1x64xf32> to vector<16x64xf32>
    %326 = arith.addf %322, %325 : vector<16x64xf32>
    %cst_135 = arith.constant 0.000000e+00 : f32
    %327 = vector.broadcast %cst_135 : f32 to vector<16x64xf32>
    %328 = arith.maximumf %326, %327 : vector<16x64xf32>
    %c1_136 = arith.constant 1 : index
    %c0_137 = arith.constant 0 : index
    %c0_138 = arith.constant 0 : index
    %329 = vector.load %arg10[%c1_136, %c0_137, %c0_138] : memref<2x64x32xf32, #tpu.memory_space<vmem>>, vector<1x64x32xf32>
    %330 = vector.shape_cast %329 : vector<1x64x32xf32> to vector<64x32xf32>
    %cst_139 = arith.constant dense<0.000000e+00> : vector<16x32xf32>
    %331 = tpu.matmul %328, %330, %cst_139 {dimension_numbers = #tpu.dot_dimension_numbers<[1], [0], [0], [1], [0, 0, 1, 1], [], []>} : vector<16x64xf32>, vector<64x32xf32>, vector<16x32xf32> -> vector<16x32xf32>
    %c1_140 = arith.constant 1 : index
    %c0_141 = arith.constant 0 : index
    %c0_142 = arith.constant 0 : index
    %332 = vector.load %arg11[%c1_140, %c0_141, %c0_142] : memref<2x1x32xf32, #tpu.memory_space<vmem>>, vector<1x1x32xf32>
    %333 = vector.shape_cast %332 : vector<1x1x32xf32> to vector<1x32xf32>
    %334 = vector.broadcast %333 : vector<1x32xf32> to vector<16x32xf32>
    %335 = arith.addf %331, %334 : vector<16x32xf32>
    %336 = arith.addf %319, %335 : vector<16x32xf32>
    %c1_143 = arith.constant 1 : index
    %c0_144 = arith.constant 0 : index
    %c0_145 = arith.constant 0 : index
    %337 = vector.load %arg12[%c1_143, %c0_144, %c0_145] : memref<2x1x32xf32, #tpu.memory_space<vmem>>, vector<1x1x32xf32>
    %338 = vector.shape_cast %337 : vector<1x1x32xf32> to vector<1x32xf32>
    %c1_146 = arith.constant 1 : index
    %c0_147 = arith.constant 0 : index
    %c0_148 = arith.constant 0 : index
    %339 = vector.load %arg13[%c1_146, %c0_147, %c0_148] : memref<2x1x32xf32, #tpu.memory_space<vmem>>, vector<1x1x32xf32>
    %340 = vector.shape_cast %339 : vector<1x1x32xf32> to vector<1x32xf32>
    %cst_149 = arith.constant dense<0.000000e+00> : vector<16xf32>
    %341 = vector.multi_reduction <add>, %336, %cst_149 [1] : vector<16x32xf32> to vector<16xf32>
    %342 = vector.shape_cast %341 : vector<16xf32> to vector<16x1xf32>
    %cst_150 = arith.constant 3.200000e+01 : f32
    %343 = vector.broadcast %cst_150 : f32 to vector<16x1xf32>
    %344 = arith.divf %342, %343 : vector<16x1xf32>
    %345 = vector.broadcast %344 : vector<16x1xf32> to vector<16x32xf32>
    %346 = arith.subf %336, %345 : vector<16x32xf32>
    %347 = arith.mulf %346, %346 : vector<16x32xf32>
    %cst_151 = arith.constant dense<0.000000e+00> : vector<16xf32>
    %348 = vector.multi_reduction <add>, %347, %cst_151 [1] : vector<16x32xf32> to vector<16xf32>
    %349 = vector.shape_cast %348 : vector<16xf32> to vector<16x1xf32>
    %cst_152 = arith.constant 3.200000e+01 : f32
    %350 = vector.broadcast %cst_152 : f32 to vector<16x1xf32>
    %351 = arith.divf %349, %350 : vector<16x1xf32>
    %352 = vector.broadcast %344 : vector<16x1xf32> to vector<16x32xf32>
    %353 = arith.subf %336, %352 : vector<16x32xf32>
    %cst_153 = arith.constant 9.99999974E-6 : f32
    %354 = vector.broadcast %cst_153 : f32 to vector<16x1xf32>
    %355 = arith.addf %351, %354 : vector<16x1xf32>
    %356 = math.rsqrt %355 : vector<16x1xf32>
    %357 = vector.broadcast %356 : vector<16x1xf32> to vector<16x32xf32>
    %358 = arith.mulf %353, %357 : vector<16x32xf32>
    %359 = vector.broadcast %338 : vector<1x32xf32> to vector<16x32xf32>
    %360 = arith.mulf %358, %359 : vector<16x32xf32>
    %361 = vector.broadcast %340 : vector<1x32xf32> to vector<16x32xf32>
    %362 = arith.addf %360, %361 : vector<16x32xf32>
    %c0_154 = arith.constant 0 : index
    %c0_155 = arith.constant 0 : index
    %363 = vector.load %arg14[%c0_154, %c0_155] : memref<1x32xf32, #tpu.memory_space<vmem>>, vector<1x32xf32>
    %c0_156 = arith.constant 0 : index
    %c0_157 = arith.constant 0 : index
    %364 = vector.load %arg15[%c0_156, %c0_157] : memref<1x32xf32, #tpu.memory_space<vmem>>, vector<1x32xf32>
    %cst_158 = arith.constant dense<0.000000e+00> : vector<16xf32>
    %365 = vector.multi_reduction <add>, %362, %cst_158 [1] : vector<16x32xf32> to vector<16xf32>
    %366 = vector.shape_cast %365 : vector<16xf32> to vector<16x1xf32>
    %cst_159 = arith.constant 3.200000e+01 : f32
    %367 = vector.broadcast %cst_159 : f32 to vector<16x1xf32>
    %368 = arith.divf %366, %367 : vector<16x1xf32>
    %369 = vector.broadcast %368 : vector<16x1xf32> to vector<16x32xf32>
    %370 = arith.subf %362, %369 : vector<16x32xf32>
    %371 = arith.mulf %370, %370 : vector<16x32xf32>
    %cst_160 = arith.constant dense<0.000000e+00> : vector<16xf32>
    %372 = vector.multi_reduction <add>, %371, %cst_160 [1] : vector<16x32xf32> to vector<16xf32>
    %373 = vector.shape_cast %372 : vector<16xf32> to vector<16x1xf32>
    %cst_161 = arith.constant 3.200000e+01 : f32
    %374 = vector.broadcast %cst_161 : f32 to vector<16x1xf32>
    %375 = arith.divf %373, %374 : vector<16x1xf32>
    %376 = vector.broadcast %368 : vector<16x1xf32> to vector<16x32xf32>
    %377 = arith.subf %362, %376 : vector<16x32xf32>
    %cst_162 = arith.constant 9.99999974E-6 : f32
    %378 = vector.broadcast %cst_162 : f32 to vector<16x1xf32>
    %379 = arith.addf %375, %378 : vector<16x1xf32>
    %380 = math.rsqrt %379 : vector<16x1xf32>
    %381 = vector.broadcast %380 : vector<16x1xf32> to vector<16x32xf32>
    %382 = arith.mulf %377, %381 : vector<16x32xf32>
    %383 = vector.broadcast %363 : vector<1x32xf32> to vector<16x32xf32>
    %384 = arith.mulf %382, %383 : vector<16x32xf32>
    %385 = vector.broadcast %364 : vector<1x32xf32> to vector<16x32xf32>
    %386 = arith.addf %384, %385 : vector<16x32xf32>
    %c0_163 = arith.constant 0 : index
    %c0_164 = arith.constant 0 : index
    %387 = vector.load %arg16[%c0_163, %c0_164] : memref<32x1xf32, #tpu.memory_space<vmem>>, vector<32x1xf32>
    %cst_165 = arith.constant dense<0.000000e+00> : vector<16x1xf32>
    %388 = tpu.matmul %386, %387, %cst_165 {dimension_numbers = #tpu.dot_dimension_numbers<[1], [0], [0], [1], [0, 0, 1, 1], [], []>} : vector<16x32xf32>, vector<32x1xf32>, vector<16x1xf32> -> vector<16x1xf32>
    %c0_166 = arith.constant 0 : index
    %c0_167 = arith.constant 0 : index
    %389 = vector.load %arg17[%c0_166, %c0_167] : memref<1x1xf32, #tpu.memory_space<vmem>>, vector<1x1xf32>
    %390 = vector.broadcast %389 : vector<1x1xf32> to vector<16x1xf32>
    %391 = arith.addf %388, %390 : vector<16x1xf32>
    %c0_168 = arith.constant 0 : index
    %c0_169 = arith.constant 0 : index
    %392 = vector.load %arg18[%c0_168, %c0_169] : memref<16x1xf32, #tpu.memory_space<vmem>>, vector<16x1xf32>
    tpu.vector_store %arg18[%c0_168, %c0_169], %391 {strides = array<i32>} : memref<16x1xf32, #tpu.memory_space<vmem>>, vector<16x1xf32>,
    return
  }
}

</mosaic_0001>

<bundles_post_ra>
// kernel: vanilla_transformer_seq2seq.1
= control target key start
LH: loop header
LB: loop body
LE: loop exit
PB: predicated region body
PF: predicated region fallthrough
CT: control target
= control target key end

     0   :  { %vm123_vm0 = vcmask 261120   ;;  %vm211_vm1 = vcmask 64512   ;;  %s3458_s20 = smov 96   ;;  %v61_v17 = vlaneseq  ;;  %v3459_v26 = vmov -1e+30   ;;  %s3460_s21 = smov 64   ;;  %s4093_s2 = inlined_call_operand.vmem [shape: f32[2,32,96], index: 2, kind: input, shape index: {}]   ;;  %s4094_s0 = inlined_call_operand.vmem [shape: f32[16,32], index: 0, kind: input, shape index: {}]   ;;  %s4095_s1 = inlined_call_operand.vmem [shape: f32[16,32], index: 1, kind: input, shape index: {}]   ;;  %s4096_s3 = inlined_call_operand.vmem [shape: f32[2,1,96], index: 3, kind: input, shape index: {}]   ;;  %s4097_s4 = inlined_call_operand.vmem [shape: f32[2,32,32], index: 4, kind: input, shape index: {}]   ;;  %s4098_s5 = inlined_call_operand.vmem [shape: f32[2,1,32], index: 5, kind: input, shape index: {}]   ;;  %s4099_s8 = inlined_call_operand.vmem [shape: f32[2,32,64], index: 8, kind: input, shape index: {}]   ;;  %s4100_s10 = inlined_call_operand.vmem [shape: f32[2,64,32], index: 10, kind: input, shape index: {}]   ;;  %s4101_s6 = inlined_call_operand.vmem [shape: f32[2,1,32], index: 6, kind: input, shape index: {}]   ;;  %s4102_s7 = inlined_call_operand.vmem [shape: f32[2,1,32], index: 7, kind: input, shape index: {}]   ;;  %s4103_s9 = inlined_call_operand.vmem [shape: f32[2,1,64], index: 9, kind: input, shape index: {}]   ;;  %s4104_s11 = inlined_call_operand.vmem [shape: f32[2,1,32], index: 11, kind: input, shape index: {}]   ;;  %s4105_s12 = inlined_call_operand.vmem [shape: f32[2,1,32], index: 12, kind: input, shape index: {}]   ;;  %s4106_s13 = inlined_call_operand.vmem [shape: f32[2,1,32], index: 13, kind: input, shape index: {}]   ;;  %s4107_s16 = inlined_call_operand.vmem [shape: f32[32,1], index: 16, kind: input, shape index: {}]   ;;  %s4108_s17 = inlined_call_operand.<no memory space> [shape: f32[1,1], index: 17, kind: input, shape index: {}]   ;;  %s4109_s14 = inlined_call_operand.vmem [shape: f32[1,32], index: 14, kind: input, shape index: {}]   ;;  %s4110_s15 = inlined_call_operand.vmem [shape: f32[1,32], index: 15, kind: input, shape index: {}]   ;;  %s4111_s18 = inlined_call_operand.vmem [shape: f32[16,1], index: 18, kind: output, shape index: {}]  }
   0x1   :  { %4131 = sst [smem:[#allocation3_spill]] %s4093_s2  ;;  %v2893_v10 = vld [vmem:[%s4096_s3] ss:$0 sm:$0xff]  ;;  %vm299_vm4 = vcmask 130048   ;;  %s3463_s23 = smov 56   ;;  %vm1049_vm5 = vcmask 195584  }
   0x2   :  { %4132 = sst [smem:[#allocation4_spill]] %s4094_s0  ;;  %v62_v18 = vshrl.u32 %v61_v17, 7  ;;  %v89_v19 = vand.u32 127, %v61_v17  ;;  %s3464_s24 = smov 80   ;;  %vm1300_vm6 = vcmask 523264   ;;  %vm2886_vm7 = vcmask 7168  }
   0x3   :  { %4133 = sst [smem:[#allocation5_spill]] %s4095_s1  ;;  %s3462_s1 = smov 88  }
   0x4   :  { %s4134_s29 = sld [smem:[#allocation3_spill]]  ;;  %v63_v20 = vadd.s32 8, %v62_v18  ;;  %v68_v21 = vand.u32 1, %v62_v18  ;;  %v94_v22 = vand.u32 1, %v89_v19  ;;  %s4127_s25 = smov 112  }
   0x5   :  { %s4135_s22 = sld [smem:[#allocation4_spill]]  ;;  %s4123_s27 = smov 72  }
   0x6   :  { %s4136_s26 = sld [smem:[#allocation5_spill]]  ;;  %v75_v23 = vand.u32 1, %v63_v20  ;;  %vm102_vm2 = vcmp.eq.s32.totalorder %v68_v21, %v94_v22  ;;  %s4121_s28 = smov 104  }
   0x7   :  { %v3619_v27 = vsel %vm102_vm2, 0.0, %v3459_v26  ;;  %s4119_s30 = smov 40   ;;  %s4115_s2 = smov 8  }
   0x8   :  { %vm103_vm3 = vcmp.eq.s32.totalorder %v75_v23, %v94_v22  ;;  %s4117_s19 = smov 16   ;;  %s4144_s0 = smov 24  }
   0x9   :  { %v3621_v30 = vsel %vm103_vm3, 0.0, %v3459_v26 }
   0xa   :  { %v115_v0 = vld [vmem:[%s4134_s29 + $0x18] sm:$0xff]  ;;  %v114_v1 = vld [vmem:[%s4134_s29 + $0x10] sm:$0xff]  ;;  %v113_v2 = vld [vmem:[%s4134_s29 + $0x8] sm:$0xff] }
   0xb   :  { %3132 = vmatprep.subr.mxu0 %v115_v0  ;;  %v106_v3 = vld [vmem:[%s4135_s22] sm:$0xff]  ;;  %v107_v4 = vld [vmem:[%s4135_s22 + $0x8] sm:$0xff]  ;;  %s3461_s22 = smov 120  }
   0xc   :  { %3133 = vmatpush3.msra.mxu0 %v115_v0  ;;  %v108_v5 = vld [vmem:[%s4136_s26] sm:$0xff]  ;;  %v109_v6 = vld [vmem:[%s4136_s26 + $0x8] sm:$0xff]  ;;  %s4125_s26 = smov 48  }
   0xd   :  { %3134 = vmatprep.subr.mxu0 %v114_v1  ;;  %v3589_v7 = vadd.f32 %v108_v5, %v106_v3  ;;  %v112_v8 = vld [vmem:[%s4134_s29] sm:$0xff]  ;;  %v3594_v9 = vadd.f32 %v109_v6, %v107_v4 }
   0xe   :  { %3135 = vmatpush3.msra.mxu0 %v114_v1 }
   0xf   :  { %3136 = vmatprep.subr.mxu0 %v113_v2  ;;  %3140 = vmatprep.mubr.msk.f32.mxu0 %vm123_vm0, %v3589_v7 }
  0x10   :  { %3137 = vmatpush3.msra.mxu0 %v113_v2 }
  0x11   :  { %3138 = vmatprep.subr.mxu0 %v112_v8 }
  0x12   :  { %3139 = vmatpush3.msra.mxu0 %v112_v8 }
  0x13   :  { %3141 = vmatmul.mubr.msk.f32.vlgmr.msra.gmra.mxu0 %vm123_vm0, %v3594_v9 }
  0xd3   :  { %v3142_v11 = vpop.f32.mrf.mxu0 }
  0xd4   :  { %v3603_v12 = vadd.f32 %v3142_v11, %v2893_v10 }
  0xd5   :  { %v196_v13 = vpop.f32.mrf.mxu0 }
  0xd6   :  { %v3605_v14 = vadd.f32 %v2893_v10, %v196_v13  ;;  %209 = vrot.lane.b32.xlu0 %v3603_v12, %s3458_s20 }
  0xd8   :  { %3147 = vmatprep.mubr.msk.f32.mxu1 %vm211_vm1, %v3605_v14 }
  0xda   :  { %207 = vrot.lane.b32.xlu0 %v3605_v14, %s3458_s20 }
 0x148   :  { %v210_v15 = vpop.permute.xlu0 %209 }
 0x149   :  { %3143 = vmatprep.subr.msk.mxu1 %vm211_vm1, %v210_v15 }
 0x14a   :  { %3144 = vmatpush3.xpose.msk.msra.mxu1 %vm211_vm1, %v210_v15 }
 0x14c   :  { %v208_v16 = vpop.permute.xlu0 %207 }
 0x14d   :  { %3145 = vmatprep.subr.msk.mxu1 %vm211_vm1, %v208_v16 }
 0x14e   :  { %3146 = vmatpush3.xpose.msk.msra.mxu1 %vm211_vm1, %v208_v16 }
 0x151   :  { %3148 = vmatmul.mubr.msk.f32.vlgmr.msra.gmra.mxu1 %vm211_vm1, %v3603_v12 }
 0x211   :  { %v3149_v24 = vpop.f32.mrf.mxu1 }
 0x212   :  { %v296_v28 = vmul.f32 0.35355338, %v3149_v24 }
 0x213   :  { %v286_v25 = vpop.f32.mrf.mxu1 }
 0x214   :  { %v295_v29 = vmul.f32 0.35355338, %v286_v25  ;;  %v298_v33 = vadd.f32 %v296_v28, %v3621_v30 }
 0x216   :  { %v297_v31 = vadd.f32 %v295_v29, %v3619_v27  ;;  %v303_v34 = vsel %vm299_vm4, %v298_v33, -inf }
 0x218   :  { %v300_v32 = vsel %vm299_vm4, %v297_v31, -inf }
 0x219   :  { %301 = vmax.xlane.f32.xlu1 %v300_v32 }
 0x21d   :  { %304 = vmax.xlane.f32.xlu1 %v303_v34 }
 0x2a2   :  { %v302_v35 = vpop.xlane.xlu1 %301 }
 0x2a3   :  { %v306_v36 = vsub.f32 %v297_v31, %v302_v35 }
 0x2a5   :  { %v308_v37 = vmul.f32 1.442695, %v306_v36 }
 0x2a6   :  { %v305_v38 = vpop.xlane.xlu1 %304 }
 0x2a7   :  { %3374 = vpow2.f32 %v308_v37  ;;  %v307_v39 = vsub.f32 %v298_v33, %v305_v38 }
 0x2a9   :  { %v310_v40 = vmul.f32 1.442695, %v307_v39 }
 0x2ab   :  { %3376 = vpow2.f32 %v310_v40 }
 0x2b4   :  { %v3375_v41 = vpop.eup %3374 }
 0x2b5   :  { %v312_v42 = vsel %vm299_vm4, %v3375_v41, 0.0 }
 0x2b6   :  { %313 = vadd.xlane.f32.xlu0 %v312_v42 }
 0x2b8   :  { %v3377_v43 = vpop.eup %3376 }
 0x2b9   :  { %v315_v44 = vsel %vm299_vm4, %v3377_v43, 0.0 }
 0x2ba   :  { %316 = vadd.xlane.f32.xlu1 %v315_v44 }
 0x2cb   :  { %324 = vrot.lane.b32.xlu1 %v3603_v12, %s3460_s21 }
 0x2cc   :  { %409 = vrot.lane.b32.xlu0 %v3605_v14, %s3461_s22 }
 0x2cf   :  { %322 = vrot.lane.b32.xlu1 %v3605_v14, %s3460_s21 }
 0x2d3   :  { %415 = vrot.lane.b32.xlu1 %v3603_v12, %s3462_s1 }
 0x2d7   :  { %413 = vrot.lane.b32.xlu1 %v3605_v14, %s3462_s1 }
 0x2db   :  { %411 = vrot.lane.b32.xlu1 %v3603_v12, %s3461_s22 }
 0x33f   :  { %v314_v45 = vpop.xlane.xlu0 %313 }
 0x340   :  { %3378 = vrcp.f32 %v314_v45 }
 0x343   :  { %v317_v46 = vpop.xlane.xlu1 %316  ;;  %v410_v55 = vpop.permute.xlu0 %409 }
 0x344   :  { %3380 = vrcp.f32 %v317_v46 }
 0x347   :  { %v325_v47 = vpop.permute.xlu1 %324 }
 0x348   :  { %3150 = vmatprep.subr.mxu1 %v325_v47 }
 0x349   :  { %3151 = vmatpush3.msra.mxu1 %v325_v47 }
 0x34b   :  { %v323_v48 = vpop.permute.xlu1 %322 }
 0x34c   :  { %3152 = vmatprep.subr.mxu1 %v323_v48 }
 0x34d   :  { %v3379_v49 = vpop.eup %3378  ;;  %3153 = vmatpush3.msra.mxu1 %v323_v48 }
 0x34e   :  { %v320_v50 = vmul.f32 %v3379_v49, %v3375_v41 }
 0x34f   :  { %v416_v51 = vpop.permute.xlu1 %415 }
 0x350   :  { %3154 = vmatprep.mubr.msk.f32.mxu1 %vm299_vm4, %v320_v50  ;;  %3157 = vmatprep.subr.msk.mxu1 %vm211_vm1, %v416_v51 }
 0x351   :  { %v3381_v52 = vpop.eup %3380 }
 0x352   :  { %v321_v53 = vmul.f32 %v3381_v52, %v3377_v43 }
 0x353   :  { %v414_v54 = vpop.permute.xlu1 %413 }
 0x354   :  { %3155 = vmatmul.mubr.msk.f32.vlgmr.msra.gmra.mxu1 %vm299_vm4, %v321_v53 }
 0x355   :  { %3158 = vmatpush3.xpose.msk.msra.mxu1 %vm211_vm1, %v416_v51  ;;  %3161 = vmatprep.mubr.msk.f32.mxu1 %vm211_vm1, %v410_v55 }
 0x356   :  { %3159 = vmatprep.subr.msk.mxu1 %vm211_vm1, %v414_v54 }
 0x357   :  { %v412_v56 = vpop.permute.xlu1 %411 }
 0x359   :  { %3160 = vmatpush3.xpose.msk.msra.mxu1 %vm211_vm1, %v414_v54 }
 0x35c   :  { %3162 = vmatmul.mubr.msk.f32.vlgmr.msra.gmra.mxu1 %vm211_vm1, %v412_v56 }
 0x414   :  { %v3649_v57 = vpop.f32.mrf.mxu1 }
 0x416   :  { %v3651_v58 = vpop.f32.mrf.mxu1 }
 0x41c   :  { %v3163_v59 = vpop.f32.mrf.mxu1 }
 0x41d   :  { %v501_v60 = vmul.f32 0.35355338, %v3163_v59 }
 0x41e   :  { %v491_v61 = vpop.f32.mrf.mxu1 }
 0x41f   :  { %v500_v62 = vmul.f32 0.35355338, %v491_v61  ;;  %v503_v63 = vadd.f32 %v501_v60, %v3621_v30 }
 0x421   :  { %v507_v0 = vsel %vm299_vm4, %v503_v63, -inf  ;;  %v502_v1 = vadd.f32 %v500_v62, %v3619_v27 }
 0x422   :  { %508 = vmax.xlane.f32.xlu0 %v507_v0 }
 0x423   :  { %v504_v2 = vsel %vm299_vm4, %v502_v1, -inf }
 0x424   :  { %505 = vmax.xlane.f32.xlu1 %v504_v2 }
 0x435   :  { %528 = vrot.lane.b32.xlu1 %v3603_v12, %s3463_s23 }
 0x438   :  { %526 = vrot.lane.b32.xlu0 %v3605_v14, %s3463_s23 }
 0x439   :  { %619 = vrot.lane.b32.xlu1 %v3603_v12, %s3464_s24 }
 0x43c   :  { %613 = vrot.lane.b32.xlu0 %v3605_v14, %s4127_s25 }
 0x43d   :  { %617 = vrot.lane.b32.xlu1 %v3605_v14, %s3464_s24 }
 0x4ab   :  { %v509_v3 = vpop.xlane.xlu0 %508 }
 0x4ac   :  { %v511_v4 = vsub.f32 %v503_v63, %v509_v3 }
 0x4ad   :  { %v506_v5 = vpop.xlane.xlu1 %505 }
 0x4ae   :  { %v514_v6 = vmul.f32 1.442695, %v511_v4  ;;  %v510_v8 = vsub.f32 %v502_v1, %v506_v5 }
 0x4af   :  { %v527_v13 = vpop.permute.xlu0 %526 }
 0x4b0   :  { %3382 = vpow2.f32 %v514_v6  ;;  %v512_v10 = vmul.f32 1.442695, %v510_v8 }
 0x4b1   :  { %v529_v11 = vpop.permute.xlu1 %528 }
 0x4b2   :  { %3384 = vpow2.f32 %v512_v10  ;;  %3164 = vmatprep.subr.mxu0 %v529_v11 }
 0x4b3   :  { %3165 = vmatpush3.msra.mxu0 %v529_v11  ;;  %v614_v28 = vpop.permute.xlu0 %613 }
 0x4b4   :  { %3166 = vmatprep.subr.mxu0 %v527_v13 }
 0x4b5   :  { %3167 = vmatpush3.msra.mxu0 %v527_v13  ;;  %v620_v15 = vpop.permute.xlu1 %619 }
 0x4b6   :  { %3171 = vmatprep.subr.msk.mxu0 %vm211_vm1, %v620_v15 }
 0x4b9   :  { %v618_v20 = vpop.permute.xlu1 %617 }
 0x4bd   :  { %v3383_v16 = vpop.eup %3382 }
 0x4be   :  { %v519_v17 = vsel %vm299_vm4, %v3383_v16, 0.0 }
 0x4bf   :  { %v3385_v18 = vpop.eup %3384  ;;  %520 = vadd.xlane.f32.xlu1 %v519_v17 }
 0x4c0   :  { %v516_v19 = vsel %vm299_vm4, %v3385_v18, 0.0 }
 0x4c3   :  { %517 = vadd.xlane.f32.xlu1 %v516_v19 }
 0x4d4   :  { %615 = vrot.lane.b32.xlu1 %v3603_v12, %s4127_s25 }
 0x548   :  { %v521_v21 = vpop.xlane.xlu1 %520 }
 0x549   :  { %3386 = vrcp.f32 %v521_v21 }
 0x54c   :  { %v518_v22 = vpop.xlane.xlu1 %517 }
 0x54d   :  { %3388 = vrcp.f32 %v518_v22 }
 0x550   :  { %v616_v29 = vpop.permute.xlu1 %615 }
 0x556   :  { %v3387_v23 = vpop.eup %3386 }
 0x557   :  { %v525_v26 = vmul.f32 %v3387_v23, %v3383_v16 }
 0x55a   :  { %v3389_v24 = vpop.eup %3388 }
 0x55b   :  { %v524_v25 = vmul.f32 %v3389_v24, %v3385_v18 }
 0x55d   :  { %3168 = vmatprep.mubr.msk.f32.mxu0 %vm299_vm4, %v524_v25 }
 0x55e   :  { %3169 = vmatmul.mubr.msk.f32.vlgmr.msra.gmra.mxu0 %vm299_vm4, %v525_v26 }
 0x55f   :  { %3172 = vmatpush3.xpose.msk.msra.mxu0 %vm211_vm1, %v620_v15  ;;  %3175 = vmatprep.mubr.msk.f32.mxu0 %vm211_vm1, %v614_v28 }
 0x560   :  { %3173 = vmatprep.subr.msk.mxu0 %vm211_vm1, %v618_v20 }
 0x563   :  { %3174 = vmatpush3.xpose.msk.msra.mxu0 %vm211_vm1, %v618_v20 }
 0x566   :  { %3176 = vmatmul.mubr.msk.f32.vlgmr.msra.gmra.mxu0 %vm211_vm1, %v616_v29 }
 0x61e   :  { %v3679_v31 = vpop.f32.mrf.mxu0 }
 0x620   :  { %v3681_v32 = vpop.f32.mrf.mxu0 }
 0x626   :  { %v3177_v33 = vpop.f32.mrf.mxu0 }
 0x627   :  { %v705_v34 = vmul.f32 0.35355338, %v3177_v33 }
 0x628   :  { %v695_v35 = vpop.f32.mrf.mxu0 }
 0x629   :  { %v704_v36 = vmul.f32 0.35355338, %v695_v35  ;;  %v707_v37 = vadd.f32 %v705_v34, %v3621_v30  ;;  %v1054_v34 = vld [vmem:[%s4097_s4 + $0x10] sm:$0xff]  ;;  %v1053_v35 = vld [vmem:[%s4097_s4 + $0x8] sm:$0xff] }
 0x62b   :  { %v711_v38 = vsel %vm299_vm4, %v707_v37, -inf  ;;  %v706_v39 = vadd.f32 %v704_v36, %v3619_v27  ;;  %v1052_v36 = vld [vmem:[%s4097_s4] sm:$0xff] }
 0x62c   :  { %712 = vmax.xlane.f32.xlu1 %v711_v38 }
 0x62d   :  { %v708_v40 = vsel %vm299_vm4, %v706_v39, -inf }
 0x62e   :  { %709 = vmax.xlane.f32.xlu0 %v708_v40 }
 0x63d   :  { %732 = vrot.lane.b32.xlu1 %v3603_v12, %s4125_s26 }
 0x641   :  { %823 = vrot.lane.b32.xlu1 %v3603_v12, %s4123_s27 }
 0x645   :  { %821 = vrot.lane.b32.xlu1 %v3605_v14, %s4123_s27 }
 0x649   :  { %819 = vrot.lane.b32.xlu1 %v3603_v12, %s4121_s28 }
 0x6b5   :  { %v713_v41 = vpop.xlane.xlu1 %712 }
 0x6b6   :  { %v715_v42 = vsub.f32 %v707_v37, %v713_v41 }
 0x6b7   :  { %v710_v43 = vpop.xlane.xlu0 %709 }
 0x6b8   :  { %v718_v44 = vmul.f32 1.442695, %v715_v42  ;;  %v714_v45 = vsub.f32 %v706_v39, %v710_v43 }
 0x6b9   :  { %v733_v46 = vpop.permute.xlu1 %732 }
 0x6ba   :  { %3390 = vpow2.f32 %v718_v44  ;;  %v716_v47 = vmul.f32 1.442695, %v714_v45  ;;  %3178 = vmatprep.subr.mxu1 %v733_v46 }
 0x6bb   :  { %3179 = vmatpush3.msra.mxu1 %v733_v46 }
 0x6bc   :  { %3392 = vpow2.f32 %v716_v47 }
 0x6bd   :  { %v824_v55 = vpop.permute.xlu1 %823 }
 0x6c1   :  { %v822_v63 = vpop.permute.xlu1 %821 }
 0x6c5   :  { %v820_v0 = vpop.permute.xlu1 %819 }
 0x6c7   :  { %v3391_v48 = vpop.eup %3390 }
 0x6c8   :  { %v723_v49 = vsel %vm299_vm4, %v3391_v48, 0.0 }
 0x6c9   :  { %v3393_v50 = vpop.eup %3392  ;;  %724 = vadd.xlane.f32.xlu0 %v723_v49 }
 0x6ca   :  { %v720_v51 = vsel %vm299_vm4, %v3393_v50, 0.0 }
 0x6cd   :  { %721 = vadd.xlane.f32.xlu0 %v720_v51 }
 0x6e3   :  { %730 = vrot.lane.b32.xlu0 %v3605_v14, %s4125_s26 }
 0x6e7   :  { %817 = vrot.lane.b32.xlu0 %v3605_v14, %s4121_s28 }
 0x752   :  { %v725_v52 = vpop.xlane.xlu0 %724 }
 0x753   :  { %3394 = vrcp.f32 %v725_v52 }
 0x756   :  { %v722_v53 = vpop.xlane.xlu0 %721 }
 0x757   :  { %3396 = vrcp.f32 %v722_v53 }
 0x75a   :  { %v731_v54 = vpop.permute.xlu0 %730 }
 0x75b   :  { %3180 = vmatprep.subr.mxu1 %v731_v54 }
 0x75c   :  { %3181 = vmatpush3.msra.mxu1 %v731_v54 }
 0x75d   :  { %3185 = vmatprep.subr.msk.mxu1 %vm211_vm1, %v824_v55 }
 0x75e   :  { %v818_v62 = vpop.permute.xlu0 %817 }
 0x760   :  { %v3395_v56 = vpop.eup %3394 }
 0x761   :  { %v729_v61 = vmul.f32 %v3395_v56, %v3391_v48 }
 0x764   :  { %v3397_v59 = vpop.eup %3396 }
 0x765   :  { %v728_v60 = vmul.f32 %v3397_v59, %v3393_v50 }
 0x767   :  { %3182 = vmatprep.mubr.msk.f32.mxu1 %vm299_vm4, %v728_v60 }
 0x768   :  { %3183 = vmatmul.mubr.msk.f32.vlgmr.msra.gmra.mxu1 %vm299_vm4, %v729_v61 }
 0x769   :  { %3186 = vmatpush3.xpose.msk.msra.mxu1 %vm211_vm1, %v824_v55  ;;  %3189 = vmatprep.mubr.msk.f32.mxu1 %vm211_vm1, %v818_v62 }
 0x76a   :  { %3187 = vmatprep.subr.msk.mxu1 %vm211_vm1, %v822_v63 }
 0x76d   :  { %3188 = vmatpush3.xpose.msk.msra.mxu1 %vm211_vm1, %v822_v63 }
 0x770   :  { %3190 = vmatmul.mubr.msk.f32.vlgmr.msra.gmra.mxu1 %vm211_vm1, %v820_v0 }
 0x828   :  { %v3184_v1 = vpop.f32.mrf.mxu1 }
 0x82a   :  { %v808_v2 = vpop.f32.mrf.mxu1 }
 0x830   :  { %v3191_v3 = vpop.f32.mrf.mxu1 }
 0x831   :  { %v909_v4 = vmul.f32 0.35355338, %v3191_v3 }
 0x832   :  { %v899_v5 = vpop.f32.mrf.mxu1 }
 0x833   :  { %v908_v6 = vmul.f32 0.35355338, %v899_v5  ;;  %v911_v8 = vadd.f32 %v909_v4, %v3621_v30  ;;  %v1193_v5 = vld [vmem:[%s4099_s8 + $0x10] sm:$0xff] }
 0x835   :  { %v915_v10 = vsel %vm299_vm4, %v911_v8, -inf  ;;  %v910_v11 = vadd.f32 %v908_v6, %v3619_v27  ;;  %v1192_v6 = vld [vmem:[%s4099_s8 + $0x8] sm:$0xff] }
 0x836   :  { %916 = vmax.xlane.f32.xlu1 %v915_v10  ;;  %v1292_v10 = vld [vmem:[%s4100_s10 + $0x38] sm:$0xff] }
 0x837   :  { %v912_v13 = vsel %vm299_vm4, %v910_v11, -inf }
 0x838   :  { %913 = vmax.xlane.f32.xlu0 %v912_v13  ;;  %v1290_v13 = vld [vmem:[%s4100_s10 + $0x28] sm:$0xff] }
 0x847   :  { %936 = vrot.lane.b32.xlu1 %v3603_v12, %s4119_s30 }
 0x84b   :  { %1023 = vrot.lane.b32.xlu1 %v3681_v32, %s4115_s2 }
 0x84f   :  { %1025 = vrot.lane.b32.xlu1 %v3679_v31, %s4115_s2  ;;  %s4129_s2 = smov 24  }
 0x853   :  { %1033 = vrot.lane.b32.xlu1 %v3184_v1, %s4117_s19 }
 0x8bf   :  { %v917_v15 = vpop.xlane.xlu1 %916 }
 0x8c0   :  { %v919_v16 = vsub.f32 %v911_v8, %v917_v15  ;;  %v1191_v8 = vld [vmem:[%s4099_s8] sm:$0xff] }
 0x8c1   :  { %v914_v17 = vpop.xlane.xlu0 %913  ;;  %v1289_v15 = vld [vmem:[%s4100_s10 + $0x20] sm:$0xff] }
 0x8c2   :  { %v922_v18 = vmul.f32 1.442695, %v919_v16  ;;  %v918_v19 = vsub.f32 %v910_v11, %v914_v17  ;;  %v1291_v11 = vld [vmem:[%s4100_s10 + $0x30] sm:$0xff] }
 0x8c3   :  { %v937_v20 = vpop.permute.xlu1 %936 }
 0x8c4   :  { %3398 = vpow2.f32 %v922_v18  ;;  %v920_v21 = vmul.f32 1.442695, %v918_v19  ;;  %3192 = vmatprep.subr.mxu0 %v937_v20 }
 0x8c5   :  { %3193 = vmatpush3.msra.mxu0 %v937_v20 }
 0x8c6   :  { %3400 = vpow2.f32 %v920_v21 }
 0x8c7   :  { %v1024_v39 = vpop.permute.xlu1 %1023 }
 0x8c8   :  { %v1045_v43 = vsel %vm211_vm1, %v3651_v58, %v1024_v39  ;;  %v2920_v58 = vld [vmem:[%s4098_s5] ss:$0 sm:$0xff] }
 0x8cb   :  { %v1026_v40 = vpop.permute.xlu1 %1025 }
 0x8cc   :  { %v1046_v45 = vsel %vm211_vm1, %v3649_v57, %v1026_v40 }
 0x8cf   :  { %v1034_v41 = vpop.permute.xlu1 %1033 }
 0x8d0   :  { %v1048_v48 = vsel %vm299_vm4, %v1046_v45, %v1034_v41 }
 0x8d1   :  { %v3399_v12 = vpop.eup %3398 }
 0x8d2   :  { %v927_v22 = vsel %vm299_vm4, %v3399_v12, 0.0 }
 0x8d3   :  { %v3401_v23 = vpop.eup %3400  ;;  %928 = vadd.xlane.f32.xlu0 %v927_v22  ;;  %v2923_v22 = vld [vmem:[%s4101_s6] ss:$0 sm:$0xff] }
 0x8d4   :  { %v924_v24 = vsel %vm299_vm4, %v3401_v23, 0.0 }
 0x8d7   :  { %925 = vadd.xlane.f32.xlu0 %v924_v24  ;;  %v2924_v24 = vld [vmem:[%s4102_s7] ss:$0 sm:$0xff] }
 0x8ed   :  { %934 = vrot.lane.b32.xlu0 %v3605_v14, %s4119_s30  ;;  %v1055_v14 = vld [vmem:[%s4097_s4 + $0x18] sm:$0xff] }
 0x8f1   :  { %1031 = vrot.lane.b32.xlu0 %v808_v2, %s4117_s19 }
 0x95c   :  { %v929_v25 = vpop.xlane.xlu0 %928 }
 0x95d   :  { %3402 = vrcp.f32 %v929_v25 }
 0x960   :  { %v926_v26 = vpop.xlane.xlu0 %925 }
 0x961   :  { %3404 = vrcp.f32 %v926_v26 }
 0x964   :  { %v935_v28 = vpop.permute.xlu0 %934 }
 0x965   :  { %3194 = vmatprep.subr.mxu0 %v935_v28 }
 0x966   :  { %3195 = vmatpush3.msra.mxu0 %v935_v28 }
 0x967   :  { %3199 = vmatprep.subr.mxu0 %v1055_v14 }
 0x968   :  { %v1032_v42 = vpop.permute.xlu0 %1031 }
 0x969   :  { %v1047_v46 = vsel %vm299_vm4, %v1045_v43, %v1032_v42  ;;  %v2928_v43 = vld [vmem:[%s4104_s11] ss:$0 sm:$0xff] }
 0x96a   :  { %v3403_v29 = vpop.eup %3402 }
 0x96b   :  { %v933_v33 = vmul.f32 %v3403_v29, %v3399_v12 }
 0x96e   :  { %v3405_v31 = vpop.eup %3404 }
 0x96f   :  { %v932_v32 = vmul.f32 %v3405_v31, %v3401_v23 }
 0x971   :  { %3196 = vmatprep.mubr.msk.f32.mxu0 %vm299_vm4, %v932_v32 }
 0x972   :  { %3197 = vmatmul.mubr.msk.f32.vlgmr.msra.gmra.mxu0 %vm299_vm4, %v933_v33  ;;  %v1288_v33 = vld [vmem:[%s4100_s10 + $0x18] sm:$0xff] }
 0x973   :  { %3200 = vmatpush3.msra.mxu0 %v1055_v14  ;;  %v1287_v14 = vld [vmem:[%s4100_s10 + $0x10] sm:$0xff] }
 0x974   :  { %3201 = vmatprep.subr.mxu0 %v1054_v34 }
 0x975   :  { %3202 = vmatpush3.msra.mxu0 %v1054_v34  ;;  %v1286_v34 = vld [vmem:[%s4100_s10 + $0x8] sm:$0xff] }
 0x976   :  { %3203 = vmatprep.subr.mxu0 %v1053_v35 }
 0x977   :  { %3204 = vmatpush3.msra.mxu0 %v1053_v35  ;;  %v1285_v35 = vld [vmem:[%s4100_s10] sm:$0xff] }
 0x978   :  { %3205 = vmatprep.subr.mxu0 %v1052_v36 }
 0x979   :  { %3206 = vmatpush3.msra.mxu0 %v1052_v36  ;;  %v2925_v36 = vld [vmem:[%s4103_s9] ss:$0 sm:$0xff] }
 0x97a   :  { %3221 = vmatprep.subr.mxu0 %v1292_v10 }
 0xa32   :  { %v3198_v37 = vpop.f32.mrf.mxu0 }
 0xa33   :  { %1041 = vrot.lane.b32.xlu1 %v3198_v37, %s4129_s2 }
 0xa34   :  { %v1012_v38 = vpop.f32.mrf.mxu0 }
 0xa35   :  { %1039 = vrot.lane.b32.xlu0 %v1012_v38, %s4129_s2 }
 0xaa5   :  { %v1042_v44 = vpop.permute.xlu1 %1041 }
 0xaa6   :  { %v1051_v50 = vsel %vm1049_vm5, %v1048_v48, %v1042_v44 }
 0xaa7   :  { %v1040_v47 = vpop.permute.xlu0 %1039 }
 0xaa8   :  { %v1050_v49 = vsel %vm1049_vm5, %v1047_v46, %v1040_v47 }
 0xaa9   :  { %3207 = vmatprep.mubr.msk.f32.mxu0 %vm123_vm0, %v1050_v49 }
 0xaaa   :  { %3208 = vmatmul.mubr.msk.f32.vlgmr.msra.gmra.mxu0 %vm123_vm0, %v1051_v50 }
 0xaab   :  { %3222 = vmatpush3.msra.mxu0 %v1292_v10 }
 0xaac   :  { %3223 = vmatprep.subr.mxu0 %v1291_v11 }
 0xaad   :  { %3224 = vmatpush3.msra.mxu0 %v1291_v11 }
 0xaae   :  { %3225 = vmatprep.subr.mxu0 %v1290_v13 }
 0xaaf   :  { %3226 = vmatpush3.msra.mxu0 %v1290_v13 }
 0xab0   :  { %3227 = vmatprep.subr.mxu0 %v1289_v15 }
 0xab1   :  { %3228 = vmatpush3.msra.mxu0 %v1289_v15 }
 0xab2   :  { %3229 = vmatprep.subr.mxu0 %v1288_v33 }
 0xab3   :  { %3230 = vmatpush3.msra.mxu0 %v1288_v33 }
 0xab4   :  { %3231 = vmatprep.subr.mxu0 %v1287_v14 }
 0xab5   :  { %3232 = vmatpush3.msra.mxu0 %v1287_v14 }
 0xab6   :  { %3233 = vmatprep.subr.mxu0 %v1286_v34 }
 0xab7   :  { %3234 = vmatpush3.msra.mxu0 %v1286_v34 }
 0xab8   :  { %3235 = vmatprep.subr.mxu0 %v1285_v35 }
 0xab9   :  { %3236 = vmatpush3.msra.mxu0 %v1285_v35 }
 0xb6a   :  { %v3209_v51 = vpop.f32.mrf.mxu0 }
 0xb6b   :  { %v1141_v52 = vadd.f32 %v3209_v51, %v2920_v58 }
 0xb6c   :  { %v1135_v57 = vpop.f32.mrf.mxu0 }
 0xb6d   :  { %v1136_v53 = vadd.f32 %v2920_v58, %v1135_v57  ;;  %v1145_v54 = vadd.f32 %v1141_v52, %v3594_v9 }
 0xb6f   :  { %v1151_v55 = vsel %vm123_vm0, %v1145_v54, 0.0  ;;  %v1144_v56 = vadd.f32 %v1136_v53, %v3589_v7  ;;  %v1194_v7 = vld [vmem:[%s4099_s8 + $0x18] sm:$0xff] }
 0xb70   :  { %1152 = vadd.xlane.f32.xlu1 %v1151_v55  ;;  %3210 = vmatprep.subr.mxu1 %v1194_v7 }
 0xb71   :  { %v1148_v59 = vsel %vm123_vm0, %v1144_v56, 0.0  ;;  %3211 = vmatpush3.msra.mxu1 %v1194_v7 }
 0xb72   :  { %1149 = vadd.xlane.f32.xlu0 %v1148_v59  ;;  %3212 = vmatprep.subr.mxu1 %v1193_v5 }
 0xb73   :  { %3213 = vmatpush3.msra.mxu1 %v1193_v5 }
 0xb74   :  { %3214 = vmatprep.subr.mxu1 %v1192_v6 }
 0xb75   :  { %3215 = vmatpush3.msra.mxu1 %v1192_v6 }
 0xb76   :  { %3216 = vmatprep.subr.mxu1 %v1191_v8 }
 0xb77   :  { %3217 = vmatpush3.msra.mxu1 %v1191_v8  ;;  %v2931_v8 = vld [vmem:[%s4105_s12] ss:$0 sm:$0xff] }
 0xbf9   :  { %v1153_v60 = vpop.xlane.xlu1 %1152 }
 0xbfa   :  { %v1156_v61 = vmul.f32 0.03125, %v1153_v60 }
 0xbfb   :  { %v1150_v62 = vpop.xlane.xlu0 %1149 }
 0xbfc   :  { %v1155_v63 = vmul.f32 0.03125, %v1150_v62  ;;  %v1158_v0 = vsub.f32 %v1145_v54, %v1156_v61  ;;  %v2936_v62 = vld [vmem:[%s4134_s29 + $0x38] sm:$0xff] }
 0xbfd   :  { %3240 = vmatprep.subr.mxu1 %v2936_v62 }
 0xbfe   :  { %v1157_v1 = vsub.f32 %v1144_v56, %v1155_v63  ;;  %v1160_v4 = vmul.f32 %v1158_v0, %v1158_v0  ;;  %v2935_v63 = vld [vmem:[%s4134_s29 + $0x30] sm:$0xff] }
 0xc00   :  { %v1159_v2 = vmul.f32 %v1157_v1, %v1157_v1  ;;  %v1164_v9 = vsel %vm123_vm0, %v1160_v4, 0.0 }
 0xc02   :  { %v1161_v3 = vsel %vm123_vm0, %v1159_v2, 0.0 }
 0xc03   :  { %1162 = vadd.xlane.f32.xlu0 %v1161_v3 }
 0xc07   :  { %1165 = vadd.xlane.f32.xlu0 %v1164_v9 }
 0xc8c   :  { %v1163_v16 = vpop.xlane.xlu0 %1162 }
 0xc8d   :  { %v1167_v17 = vmul.f32 0.03125, %v1163_v16  ;;  %v2932_v16 = vld [vmem:[%s4106_s13] ss:$0 sm:$0xff] }
 0xc8f   :  { %v1169_v18 = vadd.f32 1e-05, %v1167_v17 }
 0xc90   :  { %v1166_v19 = vpop.xlane.xlu0 %1165 }
 0xc91   :  { %3406 = vrsqrt.f32 %v1169_v18  ;;  %v1168_v20 = vmul.f32 0.03125, %v1166_v19 }
 0xc93   :  { %v1170_v21 = vadd.f32 1e-05, %v1168_v20  ;;  %v2938_v20 = vld [vmem:[%s4096_s3 + $0x1] ss:$0 sm:$0xff]  ;;  %s4137_s3 = smov 112  }
 0xc95   :  { %3408 = vrsqrt.f32 %v1170_v21 }
 0xc9e   :  { %v3407_v12 = vpop.eup %3406 }
 0xc9f   :  { %v1173_v23 = vmul.f32 %v3407_v12, %v1157_v1  ;;  %v2933_v1 = vld [vmem:[%s4134_s29 + $0x20] sm:$0xff] }
 0xca1   :  { %v1181_v25 = vmul.f32 %v2923_v22, %v1173_v23 }
 0xca2   :  { %v3409_v26 = vpop.eup %3408 }
 0xca3   :  { %v1174_v28 = vmul.f32 %v3409_v26, %v1158_v0  ;;  %v1189_v29 = vadd.f32 %v2924_v24, %v1181_v25  ;;  %v2934_v0 = vld [vmem:[%s4134_s29 + $0x28] sm:$0xff] }
 0xca5   :  { %v1182_v31 = vmul.f32 %v2923_v22, %v1174_v28  ;;  %3218 = vmatprep.mubr.msk.f32.mxu1 %vm123_vm0, %v1189_v29 }
 0xca7   :  { %v1190_v32 = vadd.f32 %v2924_v24, %v1182_v31 }
 0xca9   :  { %3219 = vmatmul.mubr.msk.f32.vlgmr.msra.gmra.mxu1 %vm123_vm0, %v1190_v32 }
 0xcaa   :  { %3241 = vmatpush3.msra.mxu1 %v2936_v62 }
 0xcab   :  { %3242 = vmatprep.subr.mxu1 %v2935_v63 }
 0xcac   :  { %3243 = vmatpush3.msra.mxu1 %v2935_v63 }
 0xcad   :  { %3244 = vmatprep.subr.mxu1 %v2934_v0 }
 0xcae   :  { %3245 = vmatpush3.msra.mxu1 %v2934_v0 }
 0xcaf   :  { %3246 = vmatprep.subr.mxu1 %v2933_v1 }
 0xcb0   :  { %3247 = vmatpush3.msra.mxu1 %v2933_v1 }
 0xd69   :  { %v3220_v37 = vpop.f32.mrf.mxu1 }
 0xd6a   :  { %v1280_v38 = vadd.f32 %v3220_v37, %v2925_v36 }
 0xd6b   :  { %v1274_v39 = vpop.f32.mrf.mxu1 }
 0xd6c   :  { %v1275_v40 = vadd.f32 %v2925_v36, %v1274_v39  ;;  %v1284_v42 = vmax.f32 %v1280_v38, 0.0 }
 0xd6e   :  { %v1283_v41 = vmax.f32 %v1275_v40, 0.0 }
 0xd70   :  { %3237 = vmatprep.mubr.msk.f32.mxu0 %vm1300_vm6, %v1283_v41 }
 0xd71   :  { %3238 = vmatmul.mubr.msk.f32.vlgmr.msra.gmra.mxu0 %vm1300_vm6, %v1284_v42 }
 0xe31   :  { %v3239_v44 = vpop.f32.mrf.mxu0 }
 0xe32   :  { %v1379_v45 = vadd.f32 %v3239_v44, %v2928_v43 }
 0xe33   :  { %v1373_v46 = vpop.f32.mrf.mxu0 }
 0xe34   :  { %v1374_v47 = vadd.f32 %v2928_v43, %v1373_v46  ;;  %v1383_v48 = vadd.f32 %v1379_v45, %v1190_v32 }
 0xe36   :  { %v1389_v49 = vsel %vm123_vm0, %v1383_v48, 0.0  ;;  %v1382_v50 = vadd.f32 %v1374_v47, %v1189_v29 }
 0xe37   :  { %1390 = vadd.xlane.f32.xlu0 %v1389_v49 }
 0xe38   :  { %v1386_v58 = vsel %vm123_vm0, %v1382_v50, 0.0 }
 0xe39   :  { %1387 = vadd.xlane.f32.xlu1 %v1386_v58 }
 0xec0   :  { %v1391_v51 = vpop.xlane.xlu0 %1390 }
 0xec1   :  { %v1393_v52 = vmul.f32 0.03125, %v1391_v51 }
 0xec2   :  { %v1388_v57 = vpop.xlane.xlu1 %1387 }
 0xec3   :  { %v1395_v53 = vsub.f32 %v1383_v48, %v1393_v52  ;;  %v1392_v54 = vmul.f32 0.03125, %v1388_v57 }
 0xec5   :  { %v1394_v55 = vsub.f32 %v1382_v50, %v1392_v54  ;;  %v1397_v56 = vmul.f32 %v1395_v53, %v1395_v53 }
 0xec7   :  { %v1401_v59 = vsel %vm123_vm0, %v1397_v56, 0.0  ;;  %v1396_v60 = vmul.f32 %v1394_v55, %v1394_v55 }
 0xec8   :  { %1402 = vadd.xlane.f32.xlu0 %v1401_v59 }
 0xec9   :  { %v1398_v61 = vsel %vm123_vm0, %v1396_v60, 0.0 }
 0xeca   :  { %1399 = vadd.xlane.f32.xlu1 %v1398_v61 }
 0xf51   :  { %v1403_v2 = vpop.xlane.xlu0 %1402 }
 0xf52   :  { %v1405_v3 = vmul.f32 0.03125, %v1403_v2 }
 0xf53   :  { %v1400_v4 = vpop.xlane.xlu1 %1399 }
 0xf54   :  { %v1407_v9 = vadd.f32 1e-05, %v1405_v3  ;;  %v1404_v7 = vmul.f32 0.03125, %v1400_v4 }
 0xf56   :  { %3410 = vrsqrt.f32 %v1407_v9  ;;  %v1406_v5 = vadd.f32 1e-05, %v1404_v7 }
 0xf58   :  { %3412 = vrsqrt.f32 %v1406_v5 }
 0xf63   :  { %v3411_v6 = vpop.eup %3410 }
 0xf64   :  { %v1411_v10 = vmul.f32 %v3411_v6, %v1395_v53 }
 0xf65   :  { %v3413_v11 = vpop.eup %3412 }
 0xf66   :  { %v1410_v13 = vmul.f32 %v3413_v11, %v1394_v55  ;;  %v1419_v15 = vmul.f32 %v2931_v8, %v1411_v10 }
 0xf68   :  { %v1418_v17 = vmul.f32 %v2931_v8, %v1410_v13  ;;  %v3836_v19 = vadd.f32 %v2932_v16, %v1419_v15 }
 0xf6a   :  { %v3834_v18 = vadd.f32 %v2932_v16, %v1418_v17 }
 0xf6c   :  { %3248 = vmatprep.mubr.msk.f32.mxu1 %vm123_vm0, %v3834_v18 }
 0xf6d   :  { %3249 = vmatmul.mubr.msk.f32.vlgmr.msra.gmra.mxu1 %vm123_vm0, %v3836_v19 }
0x102d   :  { %v3250_v21 = vpop.f32.mrf.mxu1 }
0x102e   :  { %v3845_v12 = vadd.f32 %v3250_v21, %v2938_v20 }
0x102f   :  { %v1513_v22 = vpop.f32.mrf.mxu1 }
0x1030   :  { %v3847_v23 = vadd.f32 %v2938_v20, %v1513_v22  ;;  %1526 = vrot.lane.b32.xlu1 %v3845_v12, %s3458_s20 }
0x1032   :  { %1524 = vrot.lane.b32.xlu0 %v3847_v23, %s3458_s20  ;;  %3255 = vmatprep.mubr.msk.f32.mxu1 %vm211_vm1, %v3847_v23  ;;  %s4138_s20 = smov 48  }
0x1034   :  { %1730 = vrot.lane.b32.xlu1 %v3845_v12, %s3462_s1 }
0x1036   :  { %1724 = vrot.lane.b32.xlu0 %v3847_v23, %s3461_s22 }
0x1038   :  { %1728 = vrot.lane.b32.xlu1 %v3847_v23, %s3462_s1  ;;  %s4141_s1 = smov 40  }
0x103c   :  { %1726 = vrot.lane.b32.xlu1 %v3845_v12, %s3461_s22  ;;  %s4140_s22 = smov 104  }
0x10a2   :  { %v1527_v24 = vpop.permute.xlu1 %1526 }
0x10a3   :  { %3251 = vmatprep.subr.msk.mxu1 %vm211_vm1, %v1527_v24 }
0x10a4   :  { %3252 = vmatpush3.xpose.msk.msra.mxu1 %vm211_vm1, %v1527_v24  ;;  %v1525_v25 = vpop.permute.xlu0 %1524 }
0x10a5   :  { %3253 = vmatprep.subr.msk.mxu1 %vm211_vm1, %v1525_v25 }
0x10a6   :  { %v1731_v26 = vpop.permute.xlu1 %1730 }
0x10a8   :  { %3254 = vmatpush3.xpose.msk.msra.mxu1 %vm211_vm1, %v1525_v25  ;;  %v1725_v28 = vpop.permute.xlu0 %1724 }
0x10a9   :  { %3265 = vmatprep.subr.msk.mxu1 %vm211_vm1, %v1731_v26 }
0x10aa   :  { %v1729_v29 = vpop.permute.xlu1 %1728 }
0x10ab   :  { %3256 = vmatmul.mubr.msk.f32.vlgmr.msra.gmra.mxu1 %vm211_vm1, %v3845_v12 }
0x10ac   :  { %3266 = vmatpush3.xpose.msk.msra.mxu1 %vm211_vm1, %v1731_v26  ;;  %3269 = vmatprep.mubr.msk.f32.mxu1 %vm211_vm1, %v1725_v28 }
0x10ad   :  { %3267 = vmatprep.subr.msk.mxu1 %vm211_vm1, %v1729_v29 }
0x10ae   :  { %v1727_v31 = vpop.permute.xlu1 %1726 }
0x10b0   :  { %3268 = vmatpush3.xpose.msk.msra.mxu1 %vm211_vm1, %v1729_v29 }
0x10b3   :  { %3270 = vmatmul.mubr.msk.f32.vlgmr.msra.gmra.mxu1 %vm211_vm1, %v1727_v31 }
0x116b   :  { %v3257_v32 = vpop.f32.mrf.mxu1 }
0x116c   :  { %v1612_v33 = vmul.f32 0.35355338, %v3257_v32 }
0x116d   :  { %v1602_v14 = vpop.f32.mrf.mxu1 }
0x116e   :  { %v1611_v34 = vmul.f32 0.35355338, %v1602_v14  ;;  %v1614_v35 = vadd.f32 %v1612_v33, %v3621_v30 }
0x1170   :  { %v1618_v36 = vsel %vm299_vm4, %v1614_v35, -inf  ;;  %v1613_v37 = vadd.f32 %v1611_v34, %v3619_v27 }
0x1171   :  { %1619 = vmax.xlane.f32.xlu1 %v1618_v36 }
0x1172   :  { %v1615_v38 = vsel %vm299_vm4, %v1613_v37, -inf }
0x1173   :  { %v3271_v39 = vpop.f32.mrf.mxu1  ;;  %1616 = vmax.xlane.f32.xlu0 %v1615_v38 }
0x1174   :  { %v1816_v41 = vmul.f32 0.35355338, %v3271_v39 }
0x1175   :  { %v1806_v40 = vpop.f32.mrf.mxu1 }
0x1176   :  { %v1815_v42 = vmul.f32 0.35355338, %v1806_v40  ;;  %v1818_v45 = vadd.f32 %v1816_v41, %v3621_v30 }
0x1178   :  { %v1817_v43 = vadd.f32 %v1815_v42, %v3619_v27  ;;  %v1822_v46 = vsel %vm299_vm4, %v1818_v45, -inf }
0x117a   :  { %v1819_v44 = vsel %vm299_vm4, %v1817_v43, -inf }
0x117b   :  { %1820 = vmax.xlane.f32.xlu0 %v1819_v44 }
0x117f   :  { %1823 = vmax.xlane.f32.xlu0 %v1822_v46 }
0x1182   :  { %1639 = vrot.lane.b32.xlu1 %v3845_v12, %s3460_s21 }
0x1186   :  { %1843 = vrot.lane.b32.xlu1 %v3845_v12, %s3463_s23 }
0x118a   :  { %1841 = vrot.lane.b32.xlu1 %v3847_v23, %s3463_s23  ;;  %s4142_s23 = smov 8  }
0x1195   :  { %1637 = vrot.lane.b32.xlu0 %v3847_v23, %s3460_s21  ;;  %s4139_s21 = smov 72  }
0x11fa   :  { %v1620_v47 = vpop.xlane.xlu1 %1619 }
0x11fb   :  { %v1622_v48 = vsub.f32 %v1614_v35, %v1620_v47 }
0x11fc   :  { %v1617_v49 = vpop.xlane.xlu0 %1616 }
0x11fd   :  { %v1625_v50 = vmul.f32 1.442695, %v1622_v48  ;;  %v1621_v58 = vsub.f32 %v1613_v37, %v1617_v49 }
0x11fe   :  { %v1640_v51 = vpop.permute.xlu1 %1639 }
0x11ff   :  { %3414 = vpow2.f32 %v1625_v50  ;;  %v1623_v52 = vmul.f32 1.442695, %v1621_v58  ;;  %3258 = vmatprep.subr.mxu0 %v1640_v51 }
0x1200   :  { %3259 = vmatpush3.msra.mxu0 %v1640_v51 }
0x1201   :  { %3416 = vpow2.f32 %v1623_v52 }
0x1202   :  { %v1844_v62 = vpop.permute.xlu1 %1843 }
0x1204   :  { %v1821_v57 = vpop.xlane.xlu0 %1820 }
0x1205   :  { %v1825_v2 = vsub.f32 %v1817_v43, %v1821_v57 }
0x1206   :  { %v1842_v7 = vpop.permute.xlu1 %1841 }
0x1207   :  { %v1827_v3 = vmul.f32 1.442695, %v1825_v2 }
0x1208   :  { %v1824_v53 = vpop.xlane.xlu0 %1823 }
0x1209   :  { %v1826_v54 = vsub.f32 %v1818_v45, %v1824_v53 }
0x120b   :  { %v1829_v55 = vmul.f32 1.442695, %v1826_v54 }
0x120c   :  { %v3415_v56 = vpop.eup %3414  ;;  %v1638_v59 = vpop.permute.xlu0 %1637 }
0x120d   :  { %3418 = vpow2.f32 %v1829_v55  ;;  %3260 = vmatprep.subr.mxu0 %v1638_v59  ;;  %v1630_v60 = vsel %vm299_vm4, %v3415_v56, 0.0 }
0x120e   :  { %v3417_v61 = vpop.eup %3416  ;;  %1631 = vadd.xlane.f32.xlu0 %v1630_v60  ;;  %3261 = vmatpush3.msra.mxu0 %v1638_v59  ;;  %3420 = vpow2.f32 %v1827_v3 }
0x120f   :  { %3272 = vmatprep.subr.mxu0 %v1844_v62  ;;  %v1627_v63 = vsel %vm299_vm4, %v3417_v61, 0.0 }
0x1210   :  { %1628 = vadd.xlane.f32.xlu1 %v1627_v63 }
0x121a   :  { %v3419_v0 = vpop.eup %3418 }
0x121b   :  { %v1834_v1 = vsel %vm299_vm4, %v3419_v0, 0.0  ;;  %v3421_v4 = vpop.eup %3420 }
0x121c   :  { %1835 = vadd.xlane.f32.xlu0 %v1834_v1  ;;  %v1831_v9 = vsel %vm299_vm4, %v3421_v4, 0.0 }
0x1221   :  { %1932 = vrot.lane.b32.xlu1 %v3847_v23, %s3464_s24 }
0x1232   :  { %1934 = vrot.lane.b32.xlu0 %v3845_v12, %s3464_s24  ;;  %s4143_s24 = smov 16  }
0x1236   :  { %1928 = vrot.lane.b32.xlu0 %v3847_v23, %s4137_s3 }
0x1245   :  { %1832 = vadd.xlane.f32.xlu1 %v1831_v9 }
0x1256   :  { %1930 = vrot.lane.b32.xlu1 %v3845_v12, %s4137_s3 }
0x1297   :  { %v1632_v5 = vpop.xlane.xlu0 %1631 }
0x1298   :  { %3422 = vrcp.f32 %v1632_v5 }
0x1299   :  { %v1629_v6 = vpop.xlane.xlu1 %1628 }
0x129a   :  { %3424 = vrcp.f32 %v1629_v6 }
0x129d   :  { %v1933_v17 = vpop.permute.xlu1 %1932 }
0x12a5   :  { %v3423_v8 = vpop.eup %3422  ;;  %v1836_v11 = vpop.xlane.xlu0 %1835 }
0x12a6   :  { %v1636_v15 = vmul.f32 %v3423_v8, %v3415_v56  ;;  %3426 = vrcp.f32 %v1836_v11 }
0x12a7   :  { %v3425_v10 = vpop.eup %3424 }
0x12a8   :  { %v1635_v13 = vmul.f32 %v3425_v10, %v3417_v61 }
0x12a9   :  { %v1935_v16 = vpop.permute.xlu0 %1934 }
0x12aa   :  { %3262 = vmatprep.mubr.msk.f32.mxu0 %vm299_vm4, %v1635_v13 }
0x12ab   :  { %3263 = vmatmul.mubr.msk.f32.vlgmr.msra.gmra.mxu0 %vm299_vm4, %v1636_v15 }
0x12ac   :  { %3273 = vmatpush3.msra.mxu0 %v1844_v62 }
0x12ad   :  { %3274 = vmatprep.subr.mxu0 %v1842_v7  ;;  %v1929_v26 = vpop.permute.xlu0 %1928 }
0x12ae   :  { %3275 = vmatpush3.msra.mxu0 %v1842_v7 }
0x12af   :  { %3279 = vmatprep.subr.msk.mxu0 %vm211_vm1, %v1935_v16 }
0x12b3   :  { %v3427_v21 = vpop.eup %3426 }
0x12b4   :  { %v1840_v25 = vmul.f32 %v3427_v21, %v3419_v0 }
0x12ce   :  { %v1833_v20 = vpop.xlane.xlu1 %1832 }
0x12cf   :  { %3428 = vrcp.f32 %v1833_v20 }
0x12d2   :  { %v1931_v28 = vpop.permute.xlu1 %1930 }
0x12dc   :  { %v3429_v22 = vpop.eup %3428 }
0x12dd   :  { %v1839_v24 = vmul.f32 %v3429_v22, %v3421_v4 }
0x12df   :  { %3276 = vmatprep.mubr.msk.f32.mxu0 %vm299_vm4, %v1839_v24 }
0x12e0   :  { %3277 = vmatmul.mubr.msk.f32.vlgmr.msra.gmra.mxu0 %vm299_vm4, %v1840_v25 }
0x12e1   :  { %3280 = vmatpush3.xpose.msk.msra.mxu0 %vm211_vm1, %v1935_v16  ;;  %3283 = vmatprep.mubr.msk.f32.mxu0 %vm211_vm1, %v1929_v26 }
0x12e2   :  { %3281 = vmatprep.subr.msk.mxu0 %vm211_vm1, %v1933_v17 }
0x12e5   :  { %3282 = vmatpush3.xpose.msk.msra.mxu0 %vm211_vm1, %v1933_v17 }
0x12e8   :  { %3284 = vmatmul.mubr.msk.f32.vlgmr.msra.gmra.mxu0 %vm211_vm1, %v1931_v28 }
0x136b   :  { %v3913_v29 = vpop.f32.mrf.mxu0 }
0x136d   :  { %v3915_v31 = vpop.f32.mrf.mxu0 }
0x13a0   :  { %v3917_v32 = vpop.f32.mrf.mxu0 }
0x13a2   :  { %v3919_v33 = vpop.f32.mrf.mxu0 }
0x13a8   :  { %v3285_v14 = vpop.f32.mrf.mxu0 }
0x13a9   :  { %v2020_v34 = vmul.f32 0.35355338, %v3285_v14  ;;  %v2966_v14 = vld [vmem:[%s4097_s4 + $0x28] sm:$0xff] }
0x13aa   :  { %v2010_v35 = vpop.f32.mrf.mxu0 }
0x13ab   :  { %v2019_v36 = vmul.f32 0.35355338, %v2010_v35  ;;  %v2022_v37 = vadd.f32 %v2020_v34, %v3621_v30  ;;  %v2965_v34 = vld [vmem:[%s4097_s4 + $0x20] sm:$0xff] }
0x13ad   :  { %v2026_v38 = vsel %vm299_vm4, %v2022_v37, -inf  ;;  %v2021_v39 = vadd.f32 %v2019_v36, %v3619_v27 }
0x13ae   :  { %2027 = vmax.xlane.f32.xlu1 %v2026_v38 }
0x13af   :  { %v2023_v40 = vsel %vm299_vm4, %v2021_v39, -inf }
0x13b0   :  { %2024 = vmax.xlane.f32.xlu0 %v2023_v40 }
0x13bf   :  { %2047 = vrot.lane.b32.xlu1 %v3845_v12, %s4138_s20 }
0x13c3   :  { %2138 = vrot.lane.b32.xlu1 %v3845_v12, %s4139_s21 }
0x13c7   :  { %2136 = vrot.lane.b32.xlu1 %v3847_v23, %s4139_s21 }
0x13cb   :  { %2134 = vrot.lane.b32.xlu1 %v3845_v12, %s4140_s22 }
0x1437   :  { %v2028_v41 = vpop.xlane.xlu1 %2027 }
0x1438   :  { %v2030_v42 = vsub.f32 %v2022_v37, %v2028_v41 }
0x1439   :  { %v2025_v43 = vpop.xlane.xlu0 %2024 }
0x143a   :  { %v2033_v44 = vmul.f32 1.442695, %v2030_v42  ;;  %v2029_v45 = vsub.f32 %v2021_v39, %v2025_v43 }
0x143b   :  { %v2048_v46 = vpop.permute.xlu1 %2047 }
0x143c   :  { %3430 = vpow2.f32 %v2033_v44  ;;  %v2031_v47 = vmul.f32 1.442695, %v2029_v45  ;;  %3286 = vmatprep.subr.mxu1 %v2048_v46 }
0x143d   :  { %3287 = vmatpush3.msra.mxu1 %v2048_v46 }
0x143e   :  { %3432 = vpow2.f32 %v2031_v47 }
0x143f   :  { %v2139_v53 = vpop.permute.xlu1 %2138 }
0x1443   :  { %v2137_v61 = vpop.permute.xlu1 %2136 }
0x1447   :  { %v2135_v62 = vpop.permute.xlu1 %2134 }
0x1449   :  { %v3431_v48 = vpop.eup %3430 }
0x144a   :  { %v2038_v49 = vsel %vm299_vm4, %v3431_v48, 0.0 }
0x144b   :  { %v3433_v50 = vpop.eup %3432  ;;  %2039 = vadd.xlane.f32.xlu0 %v2038_v49 }
0x144c   :  { %v2035_v58 = vsel %vm299_vm4, %v3433_v50, 0.0 }
0x144f   :  { %2036 = vadd.xlane.f32.xlu0 %v2035_v58 }
0x1465   :  { %2045 = vrot.lane.b32.xlu0 %v3847_v23, %s4138_s20 }
0x1469   :  { %2132 = vrot.lane.b32.xlu0 %v3847_v23, %s4140_s22 }
0x14d4   :  { %v2040_v51 = vpop.xlane.xlu0 %2039 }
0x14d5   :  { %3434 = vrcp.f32 %v2040_v51 }
0x14d8   :  { %v2037_v52 = vpop.xlane.xlu0 %2036 }
0x14d9   :  { %3436 = vrcp.f32 %v2037_v52 }
0x14dc   :  { %v2046_v57 = vpop.permute.xlu0 %2045 }
0x14dd   :  { %3288 = vmatprep.subr.mxu1 %v2046_v57 }
0x14de   :  { %3289 = vmatpush3.msra.mxu1 %v2046_v57 }
0x14df   :  { %3293 = vmatprep.subr.msk.mxu1 %vm211_vm1, %v2139_v53 }
0x14e0   :  { %v2133_v60 = vpop.permute.xlu0 %2132 }
0x14e2   :  { %v3435_v54 = vpop.eup %3434 }
0x14e3   :  { %v2044_v59 = vmul.f32 %v3435_v54, %v3431_v48 }
0x14e6   :  { %v3437_v55 = vpop.eup %3436 }
0x14e7   :  { %v2043_v56 = vmul.f32 %v3437_v55, %v3433_v50 }
0x14e9   :  { %3290 = vmatprep.mubr.msk.f32.mxu1 %vm299_vm4, %v2043_v56 }
0x14ea   :  { %3291 = vmatmul.mubr.msk.f32.vlgmr.msra.gmra.mxu1 %vm299_vm4, %v2044_v59 }
0x14eb   :  { %3294 = vmatpush3.xpose.msk.msra.mxu1 %vm211_vm1, %v2139_v53  ;;  %3297 = vmatprep.mubr.msk.f32.mxu1 %vm211_vm1, %v2133_v60 }
0x14ec   :  { %3295 = vmatprep.subr.msk.mxu1 %vm211_vm1, %v2137_v61 }
0x14ef   :  { %3296 = vmatpush3.xpose.msk.msra.mxu1 %vm211_vm1, %v2137_v61 }
0x14f2   :  { %3298 = vmatmul.mubr.msk.f32.vlgmr.msra.gmra.mxu1 %vm211_vm1, %v2135_v62 }
0x15aa   :  { %v3292_v63 = vpop.f32.mrf.mxu1 }
0x15ac   :  { %v2123_v0 = vpop.f32.mrf.mxu1 }
0x15b2   :  { %v3299_v1 = vpop.f32.mrf.mxu1 }
0x15b3   :  { %v2224_v2 = vmul.f32 0.35355338, %v3299_v1  ;;  %v2979_v1 = vld [vmem:[%s4099_s8 + $0x30] sm:$0xff] }
0x15b4   :  { %v2214_v3 = vpop.f32.mrf.mxu1 }
0x15b5   :  { %v2223_v4 = vmul.f32 0.35355338, %v2214_v3  ;;  %v2226_v9 = vadd.f32 %v2224_v2, %v3621_v30  ;;  %v2978_v2 = vld [vmem:[%s4099_s8 + $0x28] sm:$0xff]  ;;  %v2977_v3 = vld [vmem:[%s4099_s8 + $0x20] sm:$0xff] }
0x15b7   :  { %v2230_v7 = vsel %vm299_vm4, %v2226_v9, -inf  ;;  %v2225_v5 = vadd.f32 %v2223_v4, %v3619_v27  ;;  %v2992_v4 = vld [vmem:[%s4100_s10 + $0x78] sm:$0xff] }
0x15b8   :  { %2231 = vmax.xlane.f32.xlu1 %v2230_v7  ;;  %v2990_v7 = vld [vmem:[%s4100_s10 + $0x68] sm:$0xff] }
0x15b9   :  { %v2227_v6 = vsel %vm299_vm4, %v2225_v5, -inf }
0x15ba   :  { %2228 = vmax.xlane.f32.xlu0 %v2227_v6 }
0x15c9   :  { %2251 = vrot.lane.b32.xlu1 %v3845_v12, %s4141_s1 }
0x15cd   :  { %2338 = vrot.lane.b32.xlu1 %v3919_v33, %s4142_s23  ;;  %v2967_v33 = vld [vmem:[%s4097_s4 + $0x30] sm:$0xff] }
0x15d1   :  { %2340 = vrot.lane.b32.xlu1 %v3917_v32, %s4142_s23 }
0x15d5   :  { %2348 = vrot.lane.b32.xlu1 %v3292_v63, %s4143_s24 }
0x1641   :  { %v2232_v30 = vpop.xlane.xlu1 %2231 }
0x1642   :  { %v2234_v8 = vsub.f32 %v2226_v9, %v2232_v30  ;;  %v2991_v9 = vld [vmem:[%s4100_s10 + $0x70] sm:$0xff] }
0x1643   :  { %v2229_v10 = vpop.xlane.xlu0 %2228 }
0x1644   :  { %v2237_v11 = vmul.f32 1.442695, %v2234_v8  ;;  %v2233_v27 = vsub.f32 %v2225_v5, %v2229_v10  ;;  %v2989_v5 = vld [vmem:[%s4100_s10 + $0x60] sm:$0xff] }
0x1645   :  { %v2252_v13 = vpop.permute.xlu1 %2251 }
0x1646   :  { %3438 = vpow2.f32 %v2237_v11  ;;  %v2235_v15 = vmul.f32 1.442695, %v2233_v27  ;;  %3300 = vmatprep.subr.mxu0 %v2252_v13 }
0x1647   :  { %3301 = vmatpush3.msra.mxu0 %v2252_v13 }
0x1648   :  { %3440 = vpow2.f32 %v2235_v15  ;;  %v2975_v15 = vld [vmem:[%s4101_s6 + $0x1] ss:$0 sm:$0xff] }
0x1649   :  { %v2339_v37 = vpop.permute.xlu1 %2338 }
0x164a   :  { %v2360_v41 = vsel %vm211_vm1, %v3915_v31, %v2339_v37  ;;  %v2970_v31 = vld [vmem:[%s4098_s5 + $0x1] ss:$0 sm:$0xff] }
0x164d   :  { %v2341_v38 = vpop.permute.xlu1 %2340 }
0x164e   :  { %v2361_v43 = vsel %vm211_vm1, %v3913_v29, %v2341_v38 }
0x1651   :  { %v2349_v39 = vpop.permute.xlu1 %2348 }
0x1652   :  { %v2363_v46 = vsel %vm299_vm4, %v2361_v43, %v2349_v39  ;;  %v2994_v39 = vld [vmem:[%s4104_s11 + $0x1] ss:$0 sm:$0xff] }
0x1653   :  { %v3439_v12 = vpop.eup %3438 }
0x1654   :  { %v2242_v16 = vsel %vm299_vm4, %v3439_v12, 0.0 }
0x1655   :  { %v3441_v17 = vpop.eup %3440  ;;  %2243 = vadd.xlane.f32.xlu0 %v2242_v16  ;;  %v2976_v16 = vld [vmem:[%s4102_s7 + $0x1] ss:$0 sm:$0xff] }
0x1656   :  { %v2239_v20 = vsel %vm299_vm4, %v3441_v17, 0.0 }
0x1659   :  { %2240 = vadd.xlane.f32.xlu0 %v2239_v20 }
0x166f   :  { %2249 = vrot.lane.b32.xlu0 %v3847_v23, %s4141_s1  ;;  %v2968_v23 = vld [vmem:[%s4097_s4 + $0x38] sm:$0xff] }
0x1673   :  { %2346 = vrot.lane.b32.xlu0 %v2123_v0, %s4143_s24 }
0x16de   :  { %v2244_v21 = vpop.xlane.xlu0 %2243 }
0x16df   :  { %3442 = vrcp.f32 %v2244_v21 }
0x16e2   :  { %v2241_v22 = vpop.xlane.xlu0 %2240 }
0x16e3   :  { %3444 = vrcp.f32 %v2241_v22 }
0x16e6   :  { %v2250_v24 = vpop.permute.xlu0 %2249 }
0x16e7   :  { %3302 = vmatprep.subr.mxu0 %v2250_v24 }
0x16e8   :  { %3303 = vmatpush3.msra.mxu0 %v2250_v24 }
0x16e9   :  { %3307 = vmatprep.subr.mxu0 %v2968_v23 }
0x16ea   :  { %v2347_v40 = vpop.permute.xlu0 %2346 }
0x16eb   :  { %v2362_v44 = vsel %vm299_vm4, %v2360_v41, %v2347_v40 }
0x16ec   :  { %v3443_v25 = vpop.eup %3442 }
0x16ed   :  { %v2248_v32 = vmul.f32 %v3443_v25, %v3439_v12 }
0x16f0   :  { %v3445_v26 = vpop.eup %3444 }
0x16f1   :  { %v2247_v28 = vmul.f32 %v3445_v26, %v3441_v17  ;;  %v2988_v26 = vld [vmem:[%s4100_s10 + $0x58] sm:$0xff] }
0x16f3   :  { %3304 = vmatprep.mubr.msk.f32.mxu0 %vm299_vm4, %v2247_v28  ;;  %v2987_v28 = vld [vmem:[%s4100_s10 + $0x50] sm:$0xff] }
0x16f4   :  { %3305 = vmatmul.mubr.msk.f32.vlgmr.msra.gmra.mxu0 %vm299_vm4, %v2248_v32  ;;  %v2986_v32 = vld [vmem:[%s4100_s10 + $0x48] sm:$0xff] }
0x16f5   :  { %3308 = vmatpush3.msra.mxu0 %v2968_v23  ;;  %v2985_v23 = vld [vmem:[%s4100_s10 + $0x40] sm:$0xff] }
0x16f6   :  { %3309 = vmatprep.subr.mxu0 %v2967_v33 }
0x16f7   :  { %3310 = vmatpush3.msra.mxu0 %v2967_v33  ;;  %v2982_v33 = vld [vmem:[%s4103_s9 + $0x1] ss:$0 sm:$0xff] }
0x16f8   :  { %3311 = vmatprep.subr.mxu0 %v2966_v14 }
0x16f9   :  { %3312 = vmatpush3.msra.mxu0 %v2966_v14 }
0x16fa   :  { %3313 = vmatprep.subr.mxu0 %v2965_v34 }
0x16fb   :  { %3314 = vmatpush3.msra.mxu0 %v2965_v34 }
0x16fc   :  { %3329 = vmatprep.subr.mxu0 %v2992_v4 }
0x17b4   :  { %v3306_v35 = vpop.f32.mrf.mxu0 }
0x17b5   :  { %2356 = vrot.lane.b32.xlu1 %v3306_v35, %s4144_s0 }
0x17b6   :  { %v2327_v36 = vpop.f32.mrf.mxu0 }
0x17b7   :  { %2354 = vrot.lane.b32.xlu0 %v2327_v36, %s4144_s0 }
0x1827   :  { %v2357_v42 = vpop.permute.xlu1 %2356 }
0x1828   :  { %v2365_v48 = vsel %vm1049_vm5, %v2363_v46, %v2357_v42 }
0x1829   :  { %v2355_v45 = vpop.permute.xlu0 %2354 }
0x182a   :  { %v2364_v47 = vsel %vm1049_vm5, %v2362_v44, %v2355_v45 }
0x182b   :  { %3315 = vmatprep.mubr.msk.f32.mxu0 %vm123_vm0, %v2364_v47 }
0x182c   :  { %3316 = vmatmul.mubr.msk.f32.vlgmr.msra.gmra.mxu0 %vm123_vm0, %v2365_v48 }
0x182d   :  { %3330 = vmatpush3.msra.mxu0 %v2992_v4 }
0x182e   :  { %3331 = vmatprep.subr.mxu0 %v2991_v9 }
0x182f   :  { %3332 = vmatpush3.msra.mxu0 %v2991_v9 }
0x1830   :  { %3333 = vmatprep.subr.mxu0 %v2990_v7 }
0x1831   :  { %3334 = vmatpush3.msra.mxu0 %v2990_v7 }
0x1832   :  { %3335 = vmatprep.subr.mxu0 %v2989_v5 }
0x1833   :  { %3336 = vmatpush3.msra.mxu0 %v2989_v5 }
0x1834   :  { %3337 = vmatprep.subr.mxu0 %v2988_v26 }
0x1835   :  { %3338 = vmatpush3.msra.mxu0 %v2988_v26 }
0x1836   :  { %3339 = vmatprep.subr.mxu0 %v2987_v28 }
0x1837   :  { %3340 = vmatpush3.msra.mxu0 %v2987_v28 }
0x1838   :  { %3341 = vmatprep.subr.mxu0 %v2986_v32 }
0x1839   :  { %3342 = vmatpush3.msra.mxu0 %v2986_v32 }
0x183a   :  { %3343 = vmatprep.subr.mxu0 %v2985_v23 }
0x183b   :  { %3344 = vmatpush3.msra.mxu0 %v2985_v23 }
0x18ec   :  { %v3317_v49 = vpop.f32.mrf.mxu0 }
0x18ed   :  { %v2457_v50 = vadd.f32 %v3317_v49, %v2970_v31 }
0x18ee   :  { %v2451_v29 = vpop.f32.mrf.mxu0 }
0x18ef   :  { %v2461_v58 = vadd.f32 %v2457_v50, %v3836_v19  ;;  %v2452_v51 = vadd.f32 %v2970_v31, %v2451_v29 }
0x18f1   :  { %v2469_v52 = vsel %vm123_vm0, %v2461_v58, 0.0  ;;  %v2460_v57 = vadd.f32 %v2452_v51, %v3834_v18  ;;  %v2980_v18 = vld [vmem:[%s4099_s8 + $0x38] sm:$0xff] }
0x18f2   :  { %2470 = vadd.xlane.f32.xlu1 %v2469_v52  ;;  %3318 = vmatprep.subr.mxu1 %v2980_v18 }
0x18f3   :  { %v2466_v53 = vsel %vm123_vm0, %v2460_v57, 0.0  ;;  %3319 = vmatpush3.msra.mxu1 %v2980_v18  ;;  %v3000_v18 = vld [vmem:[%s4106_s13 + $0x1] ss:$0 sm:$0xff] }
0x18f4   :  { %2467 = vadd.xlane.f32.xlu0 %v2466_v53  ;;  %3320 = vmatprep.subr.mxu1 %v2979_v1 }
0x18f5   :  { %3321 = vmatpush3.msra.mxu1 %v2979_v1 }
0x18f6   :  { %3322 = vmatprep.subr.mxu1 %v2978_v2 }
0x18f7   :  { %3323 = vmatpush3.msra.mxu1 %v2978_v2 }
0x18f8   :  { %3324 = vmatprep.subr.mxu1 %v2977_v3 }
0x18f9   :  { %3325 = vmatpush3.msra.mxu1 %v2977_v3 }
0x197b   :  { %v2471_v54 = vpop.xlane.xlu1 %2470 }
0x197c   :  { %v2473_v55 = vmul.f32 0.03125, %v2471_v54 }
0x197d   :  { %v2468_v56 = vpop.xlane.xlu0 %2467 }
0x197e   :  { %v2472_v59 = vmul.f32 0.03125, %v2468_v56  ;;  %v2475_v60 = vsub.f32 %v2461_v58, %v2473_v55 }
0x1980   :  { %v2474_v61 = vsub.f32 %v2460_v57, %v2472_v59  ;;  %v2477_v0 = vmul.f32 %v2475_v60, %v2475_v60 }
0x1982   :  { %v2476_v62 = vmul.f32 %v2474_v61, %v2474_v61  ;;  %v2481_v19 = vsel %vm123_vm0, %v2477_v0, 0.0 }
0x1984   :  { %v2478_v63 = vsel %vm123_vm0, %v2476_v62, 0.0 }
0x1985   :  { %2479 = vadd.xlane.f32.xlu0 %v2478_v63  ;;  %v2999_v63 = vld [vmem:[%s4105_s12 + $0x1] ss:$0 sm:$0xff] }
0x1989   :  { %2482 = vadd.xlane.f32.xlu0 %v2481_v19 }
0x1a0e   :  { %v2480_v6 = vpop.xlane.xlu0 %2479 }
0x1a0f   :  { %v2484_v30 = vmul.f32 0.03125, %v2480_v6 }
0x1a11   :  { %v2486_v8 = vadd.f32 1e-05, %v2484_v30 }
0x1a12   :  { %v2483_v10 = vpop.xlane.xlu0 %2482 }
0x1a13   :  { %3446 = vrsqrt.f32 %v2486_v8  ;;  %v2485_v11 = vmul.f32 0.03125, %v2483_v10 }
0x1a15   :  { %v2487_v27 = vadd.f32 1e-05, %v2485_v11 }
0x1a17   :  { %3448 = vrsqrt.f32 %v2487_v27 }
0x1a20   :  { %v3447_v13 = vpop.eup %3446 }
0x1a21   :  { %v2490_v12 = vmul.f32 %v3447_v13, %v2474_v61 }
0x1a23   :  { %v2498_v17 = vmul.f32 %v2975_v15, %v2490_v12 }
0x1a24   :  { %v3449_v20 = vpop.eup %3448 }
0x1a25   :  { %v2491_v21 = vmul.f32 %v3449_v20, %v2475_v60  ;;  %v2506_v22 = vadd.f32 %v2976_v16, %v2498_v17  ;;  %v2797_v17 = vld [vmem:[%s4107_s16 + $0x18] sm:$0xff]  ;;  %v2796_v20 = vld [vmem:[%s4107_s16 + $0x10] sm:$0xff] }
0x1a26   :  { %3348 = vmatprep.subr.mxu1 %v2797_v17 }
0x1a27   :  { %v2499_v24 = vmul.f32 %v2975_v15, %v2491_v21  ;;  %3326 = vmatprep.mubr.msk.f32.mxu1 %vm123_vm0, %v2506_v22  ;;  %v2795_v21 = vld [vmem:[%s4107_s16 + $0x8] sm:$0xff] }
0x1a29   :  { %v2507_v25 = vadd.f32 %v2976_v16, %v2499_v24  ;;  %v23_v24 = vstv %s4108_s17 }
0x1a2a   :  { %24 = vst [vmem:[#allocation2] sm:$0x1] %v23_v24 }
0x1a2b   :  { %3327 = vmatmul.mubr.msk.f32.vlgmr.msra.gmra.mxu1 %vm123_vm0, %v2507_v25 }
0x1a2c   :  { %3349 = vmatpush3.msra.mxu1 %v2797_v17 }
0x1a2d   :  { %3350 = vmatprep.subr.mxu1 %v2796_v20 }
0x1a2e   :  { %3351 = vmatpush3.msra.mxu1 %v2796_v20 }
0x1a2f   :  { %3352 = vmatprep.subr.mxu1 %v2795_v21 }
0x1a30   :  { %3353 = vmatpush3.msra.mxu1 %v2795_v21 }
0x1aeb   :  { %v3328_v14 = vpop.f32.mrf.mxu1 }
0x1aec   :  { %v2599_v34 = vadd.f32 %v3328_v14, %v2982_v33 }
0x1aed   :  { %v2593_v35 = vpop.f32.mrf.mxu1 }
0x1aee   :  { %v2594_v36 = vadd.f32 %v2982_v33, %v2593_v35  ;;  %v2603_v38 = vmax.f32 %v2599_v34, 0.0  ;;  %v3001_v34 = vld [vmem:[%s4109_s14] ss:$0 sm:$0xff] }
0x1af0   :  { %v2602_v37 = vmax.f32 %v2594_v36, 0.0 }
0x1af2   :  { %3345 = vmatprep.mubr.msk.f32.mxu0 %vm1300_vm6, %v2602_v37 }
0x1af3   :  { %3346 = vmatmul.mubr.msk.f32.vlgmr.msra.gmra.mxu0 %vm1300_vm6, %v2603_v38 }
0x1bb3   :  { %v3347_v40 = vpop.f32.mrf.mxu0 }
0x1bb4   :  { %v2699_v41 = vadd.f32 %v3347_v40, %v2994_v39 }
0x1bb5   :  { %v2693_v42 = vpop.f32.mrf.mxu0 }
0x1bb6   :  { %v2694_v43 = vadd.f32 %v2994_v39, %v2693_v42  ;;  %v2703_v44 = vadd.f32 %v2699_v41, %v2507_v25  ;;  %v3002_v39 = vld [vmem:[%s4110_s15] ss:$0 sm:$0xff] }
0x1bb8   :  { %v2702_v45 = vadd.f32 %v2694_v43, %v2506_v22  ;;  %v2711_v46 = vsel %vm123_vm0, %v2703_v44, 0.0  ;;  %v2794_v22 = vld [vmem:[%s4107_s16] sm:$0xff] }
0x1bb9   :  { %2712 = vadd.xlane.f32.xlu0 %v2711_v46  ;;  %3354 = vmatprep.subr.mxu1 %v2794_v22  ;;  %v3003_v43 = vld [vmem:[#allocation2] ss:$0 sm:$0xff] }
0x1bba   :  { %v2708_v47 = vsel %vm123_vm0, %v2702_v45, 0.0  ;;  %3355 = vmatpush3.msra.mxu1 %v2794_v22 }
0x1bbb   :  { %2709 = vadd.xlane.f32.xlu1 %v2708_v47 }
0x1c42   :  { %v2713_v48 = vpop.xlane.xlu0 %2712 }
0x1c43   :  { %v2715_v31 = vmul.f32 0.03125, %v2713_v48 }
0x1c44   :  { %v2710_v49 = vpop.xlane.xlu1 %2709 }
0x1c45   :  { %v2717_v50 = vsub.f32 %v2703_v44, %v2715_v31  ;;  %v2714_v29 = vmul.f32 0.03125, %v2710_v49 }
0x1c47   :  { %v2716_v58 = vsub.f32 %v2702_v45, %v2714_v29  ;;  %v2719_v51 = vmul.f32 %v2717_v50, %v2717_v50 }
0x1c49   :  { %v2723_v52 = vsel %vm123_vm0, %v2719_v51, 0.0  ;;  %v2718_v57 = vmul.f32 %v2716_v58, %v2716_v58 }
0x1c4a   :  { %2724 = vadd.xlane.f32.xlu0 %v2723_v52 }
0x1c4b   :  { %v2720_v53 = vsel %vm123_vm0, %v2718_v57, 0.0 }
0x1c4c   :  { %2721 = vadd.xlane.f32.xlu1 %v2720_v53 }
0x1cd3   :  { %v2725_v54 = vpop.xlane.xlu0 %2724 }
0x1cd4   :  { %v2727_v55 = vmul.f32 0.03125, %v2725_v54 }
0x1cd5   :  { %v2722_v56 = vpop.xlane.xlu1 %2721 }
0x1cd6   :  { %v2729_v59 = vadd.f32 1e-05, %v2727_v55  ;;  %v2726_v60 = vmul.f32 0.03125, %v2722_v56 }
0x1cd8   :  { %3450 = vrsqrt.f32 %v2729_v59  ;;  %v2728_v61 = vadd.f32 1e-05, %v2726_v60 }
0x1cda   :  { %3452 = vrsqrt.f32 %v2728_v61 }
0x1ce5   :  { %v3451_v62 = vpop.eup %3450 }
0x1ce6   :  { %v2733_v0 = vmul.f32 %v3451_v62, %v2717_v50 }
0x1ce7   :  { %v3453_v19 = vpop.eup %3452 }
0x1ce8   :  { %v2741_v1 = vmul.f32 %v2999_v63, %v2733_v0  ;;  %v2732_v2 = vmul.f32 %v3453_v19, %v2716_v58 }
0x1cea   :  { %v2749_v3 = vadd.f32 %v3000_v18, %v2741_v1  ;;  %v2740_v4 = vmul.f32 %v2999_v63, %v2732_v2 }
0x1cec   :  { %v2755_v9 = vsel %vm123_vm0, %v2749_v3, 0.0  ;;  %v2748_v7 = vadd.f32 %v3000_v18, %v2740_v4 }
0x1ced   :  { %2756 = vadd.xlane.f32.xlu0 %v2755_v9 }
0x1cee   :  { %v2752_v5 = vsel %vm123_vm0, %v2748_v7, 0.0 }
0x1cef   :  { %2753 = vadd.xlane.f32.xlu1 %v2752_v5 }
0x1d76   :  { %v2757_v6 = vpop.xlane.xlu0 %2756 }
0x1d77   :  { %v2759_v30 = vmul.f32 0.03125, %v2757_v6 }
0x1d78   :  { %v2754_v8 = vpop.xlane.xlu1 %2753 }
0x1d79   :  { %v2761_v10 = vsub.f32 %v2749_v3, %v2759_v30  ;;  %v2758_v11 = vmul.f32 0.03125, %v2754_v8 }
0x1d7b   :  { %v2760_v27 = vsub.f32 %v2748_v7, %v2758_v11  ;;  %v2763_v13 = vmul.f32 %v2761_v10, %v2761_v10 }
0x1d7d   :  { %v2767_v15 = vsel %vm123_vm0, %v2763_v13, 0.0  ;;  %v2762_v12 = vmul.f32 %v2760_v27, %v2760_v27 }
0x1d7e   :  { %2768 = vadd.xlane.f32.xlu0 %v2767_v15 }
0x1d7f   :  { %v2764_v16 = vsel %vm123_vm0, %v2762_v12, 0.0 }
0x1d80   :  { %2765 = vadd.xlane.f32.xlu1 %v2764_v16 }
0x1e07   :  { %v2769_v25 = vpop.xlane.xlu0 %2768 }
0x1e08   :  { %v2771_v26 = vmul.f32 0.03125, %v2769_v25 }
0x1e09   :  { %v2766_v28 = vpop.xlane.xlu1 %2765 }
0x1e0a   :  { %v2773_v32 = vadd.f32 1e-05, %v2771_v26  ;;  %v2770_v23 = vmul.f32 0.03125, %v2766_v28 }
0x1e0c   :  { %3454 = vrsqrt.f32 %v2773_v32  ;;  %v2772_v33 = vadd.f32 1e-05, %v2770_v23 }
0x1e0e   :  { %3456 = vrsqrt.f32 %v2772_v33 }
0x1e19   :  { %v3455_v14 = vpop.eup %3454 }
0x1e1a   :  { %v2777_v35 = vmul.f32 %v3455_v14, %v2761_v10 }
0x1e1b   :  { %v3457_v36 = vpop.eup %3456 }
0x1e1c   :  { %v2776_v37 = vmul.f32 %v3457_v36, %v2760_v27  ;;  %v2785_v38 = vmul.f32 %v3001_v34, %v2777_v35 }
0x1e1e   :  { %v2784_v40 = vmul.f32 %v3001_v34, %v2776_v37  ;;  %v2793_v42 = vadd.f32 %v3002_v39, %v2785_v38 }
0x1e20   :  { %v2792_v41 = vadd.f32 %v3002_v39, %v2784_v40 }
0x1e22   :  { %3356 = vmatprep.mubr.msk.f32.mxu1 %vm123_vm0, %v2792_v41 }
0x1e23   :  { %3357 = vmatmul.mubr.msk.f32.vlgmr.msra.gmra.mxu1 %vm123_vm0, %v2793_v42 }
0x1ee3   :  { %v3358_v44 = vpop.f32.mrf.mxu1 }
0x1ee4   :  { %v2883_v45 = vadd.f32 %v3358_v44, %v3003_v43 }
0x1ee5   :  { %v2877_v46 = vpop.f32.mrf.mxu1 }
0x1ee6   :  { %2888 = vst.msk [vmem:[%s4111_s18 + $0x8] sm:$0xff] %vm2886_vm7, %v2883_v45  ;;  %v2878_v47 = vadd.f32 %v3003_v43, %v2877_v46 }
0x1ee8   :  { %2887 = vst.msk [vmem:[%s4111_s18] sm:$0xff] %vm2886_vm7, %v2878_v47 }

</bundles_post_ra>
